<compile_context>
chip_gen: v7x
topology: tpu7x:2x2x1
jax: 0.10.0
libtpu: 0.0.40
codegen_flags: <defaults>
</compile_context>

<pallas_src>
import functools

import jax
import jax.numpy as jnp
import numpy as np
from jax.experimental import pallas as pl
from jax.experimental.pallas import tpu as pltpu


def _autoencoder_kernel(x_ref,
                        w1, b1, w2, b2, w3, b3,   # encoder
                        w47, b47,                 # fused decoder-1 + anomaly-1
                        w5, b5, w6, b6,           # decoder 2, 3
                        w8r, b8,                  # anomaly 2 (row-vector form)
                        out_ref):
    f32 = jnp.float32

    def linear(h, w_ref, b_ref):
        # Matmul operands in the (possibly bf16) storage dtype, f32 MXU
        # accumulation; bias-add and activations stay in f32.
        return jnp.dot(h.astype(w_ref.dtype), w_ref[...],
                       preferred_element_type=f32) + b_ref[...]

    relu = lambda h: jnp.maximum(h, 0.0)
    sigmoid = jax.nn.sigmoid  # exp lands on the EUP slot

    x = x_ref[...]

    # ---- encoder: Linear->ReLU x3 ----
    h = relu(linear(x, w1, b1))
    h = relu(linear(h, w2, b2))
    encoded = relu(linear(h, w3, b3))                       # (bt, E), f32

    # ---- fused decoder-layer-1 + anomaly-layer-1 (both ReLU on `encoded`) ----
    n_dec = w5.shape[0]                                     # input_size // 4
    h47 = relu(linear(encoded, w47, b47))
    d = h47[:, :n_dec]
    a = h47[:, n_dec:]

    # ---- decoder tail: Linear->ReLU, Linear->Sigmoid ----
    d = relu(linear(d, w5, b5))
    decoded = sigmoid(linear(d, w6, b6))                    # (bt, D), f32

    # ---- anomaly tail: (bt, E/2) -> (bt, 1) on VPU + XLU, not the MXU ----
    anomaly = sigmoid(jnp.sum(a * w8r[...], axis=-1, keepdims=True) + b8[...])

    # ---- single unmasked lane-dense store: [decoded | encoded | anomaly | 0] ----
    D = decoded.shape[1]
    E = encoded.shape[1]
    pad_w = out_ref.shape[1] - (D + E + 1)
    parts = [decoded, encoded, anomaly]
    if pad_w:
        parts.append(jnp.zeros((decoded.shape[0], pad_w), f32))
    out_ref[...] = jnp.concatenate(parts, axis=1).astype(out_ref.dtype)


def _round_up(x, m):
    return (x + m - 1) // m * m


def _pick_batch_tile(b_pad, requested):
    """Largest multiple of 16 <= requested that divides b_pad (a multiple of 16).
    No forced >=2-step split (overhead-only on single-TC v5e/v6e)."""
    t = max(16, (min(requested, b_pad) // 16) * 16)
    while t > 16 and b_pad % t:
        t -= 16
    return t


def pack_params(params, compute_dtype=jnp.bfloat16):
    """One-time weight preparation, hoisted out of the per-call path:
    bf16 casts, decoder-1/anomaly-1 fusion, anomaly-2 weight as a row."""
    wcast = lambda a: jnp.asarray(a, compute_dtype)   # matmul weights
    bcast = lambda a: jnp.asarray(a, jnp.float32)     # biases stay f32
    w47 = jnp.concatenate([params["w4"], params["w7"]], axis=1)
    b47 = jnp.concatenate([params["b4"], params["b7"]], axis=1)
    w8_row = params["w8"].reshape(1, -1)              # (1, E//2) for VPU path
    return (
        wcast(params["w1"]), bcast(params["b1"]),
        wcast(params["w2"]), bcast(params["b2"]),
        wcast(params["w3"]), bcast(params["b3"]),
        wcast(w47), bcast(b47),
        wcast(params["w5"]), bcast(params["b5"]),
        wcast(params["w6"]), bcast(params["b6"]),
        bcast(w8_row), bcast(params["b8"]),
    )


def autoencoder_forward(x, packed, *, batch_tile=2048, out_dtype=jnp.bfloat16):
    """AutoEncoder forward. Returns (decoded, anomaly_score, encoded)."""
    B, D = x.shape
    E = packed[4].shape[1]          # w3: (D//4, E)
    compute_dtype = packed[0].dtype

    # bf16 x tiles need >= 16 sublanes: pad the batch to a multiple of 16.
    B_pad = _round_up(max(B, 16), 16)
    bt = _pick_batch_tile(B_pad, batch_tile)
    grid = (B_pad // bt,)

    x_c = x.astype(compute_dtype)
    if B_pad != B:
        x_c = jnp.pad(x_c, ((0, B_pad - B), (0, 0)))

    # Lane-dense packed output width (multiple of 128 -> unmasked stores/DMA).
    W_out = _round_up(D + E + 1, 128)

    x_spec = pl.BlockSpec((bt, D), lambda i: (i, 0))
    # Weights/biases: whole-array, resident in VMEM, no per-step pipelining.
    wb_specs = [pl.BlockSpec(memory_space=pltpu.MemorySpace.VMEM)
                for _ in packed]
    out_spec = pl.BlockSpec((bt, W_out), lambda i: (i, 0))

    # Advisory cost hint (memory-bound kernel).
    layer_dims = [(D, D // 2), (D // 2, D // 4), (D // 4, E),
                  (E, D // 4 + E // 2), (D // 4, D // 2), (D // 2, D),
                  (E // 2, 1)]
    flops = 2 * B_pad * sum(i * o for i, o in layer_dims)
    weight_bytes = sum(int(a.size) * a.dtype.itemsize for a in packed)
    bytes_accessed = (B_pad * (D * x_c.dtype.itemsize
                               + W_out * np.dtype(out_dtype).itemsize)
                      + weight_bytes)
    cost = pl.CostEstimate(flops=flops,
                           transcendentals=B_pad * (D + 1),
                           bytes_accessed=bytes_accessed)

    packed_out = pl.pallas_call(
        _autoencoder_kernel,
        out_shape=jax.ShapeDtypeStruct((B_pad, W_out), out_dtype),
        grid_spec=pltpu.PrefetchScalarGridSpec(
            num_scalar_prefetch=0,
            grid=grid,
            in_specs=[x_spec] + wb_specs,
            out_specs=out_spec,
        ),
        compiler_params=pltpu.CompilerParams(
            dimension_semantics=("parallel",),
            # < 10 MiB actually used at bt=2048; comfortable under v7x 64 MiB.
            vmem_limit_bytes=40 * 1024 * 1024,
        ),
        cost_estimate=cost,
    )(x_c, *packed)

    decoded = packed_out[:B, :D]
    encoded = packed_out[:B, D:D + E]
    anomaly = packed_out[:B, D + E:D + E + 1]
    return decoded, anomaly, encoded


def make_autoencoder_forward(params, *, batch_tile=2048,
                             compute_dtype=jnp.bfloat16,
                             out_dtype=jnp.bfloat16):
    """Pre-pack weights once and return a jitted forward fn of x."""
    packed = pack_params(params, compute_dtype)
    fwd = functools.partial(autoencoder_forward, packed=packed,
                            batch_tile=batch_tile, out_dtype=out_dtype)
    return jax.jit(lambda x: fwd(x))


def init_params(key, input_size, encoding_dim=32):
    """Deterministic init matching PyTorch nn.Linear shapes.
    Weights stored as [in, out] (transposed from torch's [out, in])."""
    dims = [
        (input_size, input_size // 2),        # enc 1
        (input_size // 2, input_size // 4),   # enc 2
        (input_size // 4, encoding_dim),      # enc 3
        (encoding_dim, input_size // 4),      # dec 1
        (input_size // 4, input_size // 2),   # dec 2
        (input_size // 2, input_size),        # dec 3
        (encoding_dim, encoding_dim // 2),    # anomaly 1
        (encoding_dim // 2, 1),               # anomaly 2
    ]
    params = {}
    for idx, (din, dout) in enumerate(dims, start=1):
        key, kw, kb = jax.random.split(key, 3)
        bound = 1.0 / (din ** 0.5)
        params[f"w{idx}"] = jax.random.uniform(
            kw, (din, dout), jnp.float32, -bound, bound)
        params[f"b{idx}"] = jax.random.uniform(
            kb, (1, dout), jnp.float32, -bound, bound)
    return params


def _reference_forward(x, p):
    """Pure-JAX f32 reference for correctness checking."""
    relu = lambda h: jnp.maximum(h, 0.0)
    sig = jax.nn.sigmoid
    h = relu(x @ p["w1"] + p["b1"])
    h = relu(h @ p["w2"] + p["b2"])
    enc = relu(h @ p["w3"] + p["b3"])
    d = relu(enc @ p["w4"] + p["b4"])
    d = relu(d @ p["w5"] + p["b5"])
    dec = sig(d @ p["w6"] + p["b6"])
    a = relu(enc @ p["w7"] + p["b7"])
    an = sig(a @ p["w8"] + p["b8"])
    return dec, an, enc


if __name__ == "__main__":
    INPUT_SIZE = 128
    ENCODING_DIM = 32
    BATCH = 128   # single 128-row tile, 1 grid step

    root = jax.random.PRNGKey(0)
    kx, kp = jax.random.split(root)
    x = jax.random.normal(kx, (BATCH, INPUT_SIZE), jnp.float32)
    params = init_params(kp, INPUT_SIZE, ENCODING_DIM)

    ref_dec, ref_an, ref_enc = _reference_forward(x, params)

    # 1) f32 end-to-end: tight check.
    fwd32 = make_autoencoder_forward(params, compute_dtype=jnp.float32,
                                     out_dtype=jnp.float32)
    dec32, an32, enc32 = jax.block_until_ready(fwd32(x))
    assert dec32.shape == (BATCH, INPUT_SIZE)
    assert an32.shape == (BATCH, 1)
    assert enc32.shape == (BATCH, ENCODING_DIM)
    assert jnp.allclose(dec32, ref_dec, atol=1e-4, rtol=1e-4)
    assert jnp.allclose(an32, ref_an, atol=1e-4, rtol=1e-4)
    assert jnp.allclose(enc32, ref_enc, atol=1e-4, rtol=1e-4)

    # 2) Default perf config: bf16 storage + bf16 output, f32 MXU accumulation.
    fwd16 = make_autoencoder_forward(params)
    dec16, an16, enc16 = jax.block_until_ready(fwd16(x))
    assert dec16.shape == (BATCH, INPUT_SIZE)
    assert an16.shape == (BATCH, 1)
    assert enc16.shape == (BATCH, ENCODING_DIM)
    assert jnp.allclose(dec16.astype(jnp.float32), ref_dec, atol=5e-2, rtol=5e-2)
    assert jnp.allclose(an16.astype(jnp.float32), ref_an, atol=5e-2, rtol=5e-2)
    assert jnp.allclose(enc16.astype(jnp.float32), ref_enc, atol=5e-2, rtol=5e-2)

    print("KERNEL_OK")
</pallas_src>

<mosaic_0001>
module attributes {stable_mosaic.version = 11 : i64} {
  func.func @_autoencoder_kernel(%arg0: i32, %arg1: memref<128x128xf32, #tpu.memory_space<vmem>>, %arg2: memref<128x64xf32, #tpu.memory_space<vmem>>, %arg3: memref<1x64xf32, #tpu.memory_space<vmem>>, %arg4: memref<64x32xf32, #tpu.memory_space<vmem>>, %arg5: memref<1x32xf32, #tpu.memory_space<vmem>>, %arg6: memref<32x32xf32, #tpu.memory_space<vmem>>, %arg7: memref<1x32xf32, #tpu.memory_space<vmem>>, %arg8: memref<32x48xf32, #tpu.memory_space<vmem>>, %arg9: memref<1x48xf32, #tpu.memory_space<vmem>>, %arg10: memref<32x64xf32, #tpu.memory_space<vmem>>, %arg11: memref<1x64xf32, #tpu.memory_space<vmem>>, %arg12: memref<64x128xf32, #tpu.memory_space<vmem>>, %arg13: memref<1x128xf32, #tpu.memory_space<vmem>>, %arg14: memref<1x16xf32, #tpu.memory_space<vmem>>, %arg15: memref<1x1xf32, #tpu.memory_space<vmem>>, %arg16: memref<128x256xf32, #tpu.memory_space<vmem>>) attributes {dimension_semantics = [#tpu.dimension_semantics<parallel>], iteration_bounds = array<i64: 1>, scalar_prefetch = 0 : i64, scratch_operands = 0 : i64, tpu.core_type = #tpu.core_type<tc>, window_params = [{transform_indices = @transform_0, window_bounds = array<i64: 128, 128>}, {pipeline_mode = #tpu.pipeline_mode<synchronous>, transform_indices = @transform_1, window_bounds = array<i64: 128, 64>}, {pipeline_mode = #tpu.pipeline_mode<synchronous>, transform_indices = @transform_2, window_bounds = array<i64: 1, 64>}, {pipeline_mode = #tpu.pipeline_mode<synchronous>, transform_indices = @transform_3, window_bounds = array<i64: 64, 32>}, {pipeline_mode = #tpu.pipeline_mode<synchronous>, transform_indices = @transform_4, window_bounds = array<i64: 1, 32>}, {pipeline_mode = #tpu.pipeline_mode<synchronous>, transform_indices = @transform_5, window_bounds = array<i64: 32, 32>}, {pipeline_mode = #tpu.pipeline_mode<synchronous>, transform_indices = @transform_6, window_bounds = array<i64: 1, 32>}, {pipeline_mode = #tpu.pipeline_mode<synchronous>, transform_indices = @transform_7, window_bounds = array<i64: 32, 48>}, {pipeline_mode = #tpu.pipeline_mode<synchronous>, transform_indices = @transform_8, window_bounds = array<i64: 1, 48>}, {pipeline_mode = #tpu.pipeline_mode<synchronous>, transform_indices = @transform_9, window_bounds = array<i64: 32, 64>}, {pipeline_mode = #tpu.pipeline_mode<synchronous>, transform_indices = @transform_10, window_bounds = array<i64: 1, 64>}, {pipeline_mode = #tpu.pipeline_mode<synchronous>, transform_indices = @transform_11, window_bounds = array<i64: 64, 128>}, {pipeline_mode = #tpu.pipeline_mode<synchronous>, transform_indices = @transform_12, window_bounds = array<i64: 1, 128>}, {pipeline_mode = #tpu.pipeline_mode<synchronous>, transform_indices = @transform_13, window_bounds = array<i64: 1, 16>}, {pipeline_mode = #tpu.pipeline_mode<synchronous>, transform_indices = @transform_14, window_bounds = array<i64: 1, 1>}, {transform_indices = @transform_15, window_bounds = array<i64: 128, 256>}]} {
    %c0 = arith.constant 0 : index
    %c0_0 = arith.constant 0 : index
    %0 = vector.load %arg1[%c0, %c0_0] : memref<128x128xf32, #tpu.memory_space<vmem>>, vector<128x128xf32>
    %c0_1 = arith.constant 0 : index
    %c0_2 = arith.constant 0 : index
    %1 = vector.load %arg2[%c0_1, %c0_2] : memref<128x64xf32, #tpu.memory_space<vmem>>, vector<128x64xf32>
    %cst = arith.constant dense<0.000000e+00> : vector<128x64xf32>
    %2 = tpu.matmul %0, %1, %cst {dimension_numbers = #tpu.dot_dimension_numbers<[1], [0], [0], [1], [0, 0, 1, 1], [], []>} : vector<128x128xf32>, vector<128x64xf32>, vector<128x64xf32> -> vector<128x64xf32>
    %c0_3 = arith.constant 0 : index
    %c0_4 = arith.constant 0 : index
    %3 = vector.load %arg3[%c0_3, %c0_4] : memref<1x64xf32, #tpu.memory_space<vmem>>, vector<1x64xf32>
    %4 = vector.broadcast %3 : vector<1x64xf32> to vector<128x64xf32>
    %5 = arith.addf %2, %4 : vector<128x64xf32>
    %cst_5 = arith.constant 0.000000e+00 : f32
    %6 = vector.broadcast %cst_5 : f32 to vector<128x64xf32>
    %7 = arith.maximumf %5, %6 : vector<128x64xf32>
    %c0_6 = arith.constant 0 : index
    %c0_7 = arith.constant 0 : index
    %8 = vector.load %arg4[%c0_6, %c0_7] : memref<64x32xf32, #tpu.memory_space<vmem>>, vector<64x32xf32>
    %cst_8 = arith.constant dense<0.000000e+00> : vector<128x32xf32>
    %9 = tpu.matmul %7, %8, %cst_8 {dimension_numbers = #tpu.dot_dimension_numbers<[1], [0], [0], [1], [0, 0, 1, 1], [], []>} : vector<128x64xf32>, vector<64x32xf32>, vector<128x32xf32> -> vector<128x32xf32>
    %c0_9 = arith.constant 0 : index
    %c0_10 = arith.constant 0 : index
    %10 = vector.load %arg5[%c0_9, %c0_10] : memref<1x32xf32, #tpu.memory_space<vmem>>, vector<1x32xf32>
    %11 = vector.broadcast %10 : vector<1x32xf32> to vector<128x32xf32>
    %12 = arith.addf %9, %11 : vector<128x32xf32>
    %cst_11 = arith.constant 0.000000e+00 : f32
    %13 = vector.broadcast %cst_11 : f32 to vector<128x32xf32>
    %14 = arith.maximumf %12, %13 : vector<128x32xf32>
    %c0_12 = arith.constant 0 : index
    %c0_13 = arith.constant 0 : index
    %15 = vector.load %arg6[%c0_12, %c0_13] : memref<32x32xf32, #tpu.memory_space<vmem>>, vector<32x32xf32>
    %cst_14 = arith.constant dense<0.000000e+00> : vector<128x32xf32>
    %16 = tpu.matmul %14, %15, %cst_14 {dimension_numbers = #tpu.dot_dimension_numbers<[1], [0], [0], [1], [0, 0, 1, 1], [], []>} : vector<128x32xf32>, vector<32x32xf32>, vector<128x32xf32> -> vector<128x32xf32>
    %c0_15 = arith.constant 0 : index
    %c0_16 = arith.constant 0 : index
    %17 = vector.load %arg7[%c0_15, %c0_16] : memref<1x32xf32, #tpu.memory_space<vmem>>, vector<1x32xf32>
    %18 = vector.broadcast %17 : vector<1x32xf32> to vector<128x32xf32>
    %19 = arith.addf %16, %18 : vector<128x32xf32>
    %cst_17 = arith.constant 0.000000e+00 : f32
    %20 = vector.broadcast %cst_17 : f32 to vector<128x32xf32>
    %21 = arith.maximumf %19, %20 : vector<128x32xf32>
    %c0_18 = arith.constant 0 : index
    %c0_19 = arith.constant 0 : index
    %22 = vector.load %arg8[%c0_18, %c0_19] : memref<32x48xf32, #tpu.memory_space<vmem>>, vector<32x48xf32>
    %cst_20 = arith.constant dense<0.000000e+00> : vector<128x48xf32>
    %23 = tpu.matmul %21, %22, %cst_20 {dimension_numbers = #tpu.dot_dimension_numbers<[1], [0], [0], [1], [0, 0, 1, 1], [], []>} : vector<128x32xf32>, vector<32x48xf32>, vector<128x48xf32> -> vector<128x48xf32>
    %c0_21 = arith.constant 0 : index
    %c0_22 = arith.constant 0 : index
    %24 = vector.load %arg9[%c0_21, %c0_22] : memref<1x48xf32, #tpu.memory_space<vmem>>, vector<1x48xf32>
    %25 = vector.broadcast %24 : vector<1x48xf32> to vector<128x48xf32>
    %26 = arith.addf %23, %25 : vector<128x48xf32>
    %cst_23 = arith.constant 0.000000e+00 : f32
    %27 = vector.broadcast %cst_23 : f32 to vector<128x48xf32>
    %28 = arith.maximumf %26, %27 : vector<128x48xf32>
    %29 = vector.extract_strided_slice %28 {offsets = [0, 0], sizes = [128, 32], strides = [1, 1]} : vector<128x48xf32> to vector<128x32xf32>
    %30 = vector.extract_strided_slice %28 {offsets = [0, 32], sizes = [128, 16], strides = [1, 1]} : vector<128x48xf32> to vector<128x16xf32>
    %c0_24 = arith.constant 0 : index
    %c0_25 = arith.constant 0 : index
    %31 = vector.load %arg10[%c0_24, %c0_25] : memref<32x64xf32, #tpu.memory_space<vmem>>, vector<32x64xf32>
    %cst_26 = arith.constant dense<0.000000e+00> : vector<128x64xf32>
    %32 = tpu.matmul %29, %31, %cst_26 {dimension_numbers = #tpu.dot_dimension_numbers<[1], [0], [0], [1], [0, 0, 1, 1], [], []>} : vector<128x32xf32>, vector<32x64xf32>, vector<128x64xf32> -> vector<128x64xf32>
    %c0_27 = arith.constant 0 : index
    %c0_28 = arith.constant 0 : index
    %33 = vector.load %arg11[%c0_27, %c0_28] : memref<1x64xf32, #tpu.memory_space<vmem>>, vector<1x64xf32>
    %34 = vector.broadcast %33 : vector<1x64xf32> to vector<128x64xf32>
    %35 = arith.addf %32, %34 : vector<128x64xf32>
    %cst_29 = arith.constant 0.000000e+00 : f32
    %36 = vector.broadcast %cst_29 : f32 to vector<128x64xf32>
    %37 = arith.maximumf %35, %36 : vector<128x64xf32>
    %c0_30 = arith.constant 0 : index
    %c0_31 = arith.constant 0 : index
    %38 = vector.load %arg12[%c0_30, %c0_31] : memref<64x128xf32, #tpu.memory_space<vmem>>, vector<64x128xf32>
    %cst_32 = arith.constant dense<0.000000e+00> : vector<128x128xf32>
    %39 = tpu.matmul %37, %38, %cst_32 {dimension_numbers = #tpu.dot_dimension_numbers<[1], [0], [0], [1], [0, 0, 1, 1], [], []>} : vector<128x64xf32>, vector<64x128xf32>, vector<128x128xf32> -> vector<128x128xf32>
    %c0_33 = arith.constant 0 : index
    %c0_34 = arith.constant 0 : index
    %40 = vector.load %arg13[%c0_33, %c0_34] : memref<1x128xf32, #tpu.memory_space<vmem>>, vector<1x128xf32>
    %41 = vector.broadcast %40 : vector<1x128xf32> to vector<128x128xf32>
    %42 = arith.addf %39, %41 : vector<128x128xf32>
    %43 = arith.negf %42 : vector<128x128xf32>
    %44 = math.exp %43 : vector<128x128xf32>
    %cst_35 = arith.constant 1.000000e+00 : f32
    %45 = vector.broadcast %cst_35 : f32 to vector<128x128xf32>
    %46 = arith.addf %45, %44 : vector<128x128xf32>
    %47 = arith.divf %45, %46 : vector<128x128xf32>
    %c0_36 = arith.constant 0 : index
    %c0_37 = arith.constant 0 : index
    %48 = vector.load %arg14[%c0_36, %c0_37] : memref<1x16xf32, #tpu.memory_space<vmem>>, vector<1x16xf32>
    %49 = vector.broadcast %48 : vector<1x16xf32> to vector<128x16xf32>
    %50 = arith.mulf %30, %49 : vector<128x16xf32>
    %cst_38 = arith.constant dense<0.000000e+00> : vector<128xf32>
    %51 = vector.multi_reduction <add>, %50, %cst_38 [1] : vector<128x16xf32> to vector<128xf32>
    %52 = vector.shape_cast %51 : vector<128xf32> to vector<128x1xf32>
    %c0_39 = arith.constant 0 : index
    %c0_40 = arith.constant 0 : index
    %53 = vector.load %arg15[%c0_39, %c0_40] : memref<1x1xf32, #tpu.memory_space<vmem>>, vector<1x1xf32>
    %54 = vector.broadcast %53 : vector<1x1xf32> to vector<128x1xf32>
    %55 = arith.addf %52, %54 : vector<128x1xf32>
    %56 = arith.negf %55 : vector<128x1xf32>
    %57 = math.exp %56 : vector<128x1xf32>
    %cst_41 = arith.constant 1.000000e+00 : f32
    %58 = vector.broadcast %cst_41 : f32 to vector<128x1xf32>
    %59 = arith.addf %58, %57 : vector<128x1xf32>
    %60 = arith.divf %58, %59 : vector<128x1xf32>
    %cst_42 = arith.constant 0.000000e+00 : f32
    %61 = vector.broadcast %cst_42 : f32 to vector<128x95xf32>
    %62 = tpu.concatenate %47, %21, %60, %61 in 1 : vector<128x128xf32>, vector<128x32xf32>, vector<128x1xf32>, vector<128x95xf32> -> vector<128x256xf32>
    %c0_43 = arith.constant 0 : index
    %c0_44 = arith.constant 0 : index
    %63 = vector.load %arg16[%c0_43, %c0_44] : memref<128x256xf32, #tpu.memory_space<vmem>>, vector<128x256xf32>
    tpu.vector_store %arg16[%c0_43, %c0_44], %62 {strides = array<i32>} : memref<128x256xf32, #tpu.memory_space<vmem>>, vector<128x256xf32>,
    return
  }
  func.func @transform_0(%arg0: i32) -> (i32, i32) {
    %c0_i32 = arith.constant 0 : i32
    %c0_i32_0 = arith.constant 0 : i32
    return %arg0, %c0_i32 : i32, i32
  }
  func.func @transform_1(%arg0: i32) -> (i32, i32) {
    %c0_i32 = arith.constant 0 : i32
    %c0_i32_0 = arith.constant 0 : i32
    %c0_i32_1 = arith.constant 0 : i32
    return %c0_i32, %c0_i32_0 : i32, i32
  }
  func.func @transform_2(%arg0: i32) -> (i32, i32) {
    %c0_i32 = arith.constant 0 : i32
    %c0_i32_0 = arith.constant 0 : i32
    %c0_i32_1 = arith.constant 0 : i32
    return %c0_i32, %c0_i32_0 : i32, i32
  }
  func.func @transform_3(%arg0: i32) -> (i32, i32) {
    %c0_i32 = arith.constant 0 : i32
    %c0_i32_0 = arith.constant 0 : i32
    %c0_i32_1 = arith.constant 0 : i32
    return %c0_i32, %c0_i32_0 : i32, i32
  }
  func.func @transform_4(%arg0: i32) -> (i32, i32) {
    %c0_i32 = arith.constant 0 : i32
    %c0_i32_0 = arith.constant 0 : i32
    %c0_i32_1 = arith.constant 0 : i32
    return %c0_i32, %c0_i32_0 : i32, i32
  }
  func.func @transform_5(%arg0: i32) -> (i32, i32) {
    %c0_i32 = arith.constant 0 : i32
    %c0_i32_0 = arith.constant 0 : i32
    %c0_i32_1 = arith.constant 0 : i32
    return %c0_i32, %c0_i32_0 : i32, i32
  }
  func.func @transform_6(%arg0: i32) -> (i32, i32) {
    %c0_i32 = arith.constant 0 : i32
    %c0_i32_0 = arith.constant 0 : i32
    %c0_i32_1 = arith.constant 0 : i32
    return %c0_i32, %c0_i32_0 : i32, i32
  }
  func.func @transform_7(%arg0: i32) -> (i32, i32) {
    %c0_i32 = arith.constant 0 : i32
    %c0_i32_0 = arith.constant 0 : i32
    %c0_i32_1 = arith.constant 0 : i32
    return %c0_i32, %c0_i32_0 : i32, i32
  }
  func.func @transform_8(%arg0: i32) -> (i32, i32) {
    %c0_i32 = arith.constant 0 : i32
    %c0_i32_0 = arith.constant 0 : i32
    %c0_i32_1 = arith.constant 0 : i32
    return %c0_i32, %c0_i32_0 : i32, i32
  }
  func.func @transform_9(%arg0: i32) -> (i32, i32) {
    %c0_i32 = arith.constant 0 : i32
    %c0_i32_0 = arith.constant 0 : i32
    %c0_i32_1 = arith.constant 0 : i32
    return %c0_i32, %c0_i32_0 : i32, i32
  }
  func.func @transform_10(%arg0: i32) -> (i32, i32) {
    %c0_i32 = arith.constant 0 : i32
    %c0_i32_0 = arith.constant 0 : i32
    %c0_i32_1 = arith.constant 0 : i32
    return %c0_i32, %c0_i32_0 : i32, i32
  }
  func.func @transform_11(%arg0: i32) -> (i32, i32) {
    %c0_i32 = arith.constant 0 : i32
    %c0_i32_0 = arith.constant 0 : i32
    %c0_i32_1 = arith.constant 0 : i32
    return %c0_i32, %c0_i32_0 : i32, i32
  }
  func.func @transform_12(%arg0: i32) -> (i32, i32) {
    %c0_i32 = arith.constant 0 : i32
    %c0_i32_0 = arith.constant 0 : i32
    %c0_i32_1 = arith.constant 0 : i32
    return %c0_i32, %c0_i32_0 : i32, i32
  }
  func.func @transform_13(%arg0: i32) -> (i32, i32) {
    %c0_i32 = arith.constant 0 : i32
    %c0_i32_0 = arith.constant 0 : i32
    %c0_i32_1 = arith.constant 0 : i32
    return %c0_i32, %c0_i32_0 : i32, i32
  }
  func.func @transform_14(%arg0: i32) -> (i32, i32) {
    %c0_i32 = arith.constant 0 : i32
    %c0_i32_0 = arith.constant 0 : i32
    %c0_i32_1 = arith.constant 0 : i32
    return %c0_i32, %c0_i32_0 : i32, i32
  }
  func.func @transform_15(%arg0: i32) -> (i32, i32) {
    %c0_i32 = arith.constant 0 : i32
    %c0_i32_0 = arith.constant 0 : i32
    return %arg0, %c0_i32 : i32, i32
  }
}

</mosaic_0001>

<bundles_post_ra>
// kernel: _lambda_.1
= control target key start
LH: loop header
LB: loop body
LE: loop exit
PB: predicated region body
PF: predicated region fallthrough
CT: control target
= control target key end

     0   :  { %s3572_s0 = inlined_call_operand.hbm [shape: f32[128,128], index: 0, kind: input, shape index: {}]   ;;  %s3573_s1 = inlined_call_operand.hbm [shape: f32[128,64], index: 1, kind: input, shape index: {}]   ;;  %s3574_s2 = inlined_call_operand.vmem [shape: f32[1,64], index: 2, kind: input, shape index: {}]   ;;  %s3575_s3 = inlined_call_operand.hbm [shape: f32[64,32], index: 3, kind: input, shape index: {}]   ;;  %s3576_s4 = inlined_call_operand.vmem [shape: f32[1,32], index: 4, kind: input, shape index: {}]   ;;  %s3577_s5 = inlined_call_operand.vmem [shape: f32[32,32], index: 5, kind: input, shape index: {}]   ;;  %s3578_s6 = inlined_call_operand.vmem [shape: f32[1,32], index: 6, kind: input, shape index: {}]   ;;  %s3579_s7 = inlined_call_operand.hbm [shape: f32[32,48], index: 7, kind: input, shape index: {}]   ;;  %s3580_s8 = inlined_call_operand.vmem [shape: f32[1,48], index: 8, kind: input, shape index: {}]   ;;  %s3581_s9 = inlined_call_operand.hbm [shape: f32[32,64], index: 9, kind: input, shape index: {}]   ;;  %s3582_s10 = inlined_call_operand.vmem [shape: f32[1,64], index: 10, kind: input, shape index: {}]   ;;  %s3583_s11 = inlined_call_operand.hbm [shape: f32[64,128], index: 11, kind: input, shape index: {}]   ;;  %s3584_s12 = inlined_call_operand.hbm [shape: f32[1,128], index: 12, kind: input, shape index: {}]   ;;  %s3585_s13 = inlined_call_operand.hbm [shape: f32[1,16], index: 13, kind: input, shape index: {}]   ;;  %s3586_s14 = inlined_call_operand.<no memory space> [shape: f32[1,1], index: 14, kind: input, shape index: {}]   ;;  %s3587_s15 = inlined_call_operand.vmem [shape: f32[128,256], index: 15, kind: output, shape index: {}]  }
   0x1   :  { %v20_v0 = vstv %s3586_s14 }
   0x2   :  { %21 = vst [vmem:[#allocation2] sm:$0x1] %v20_v0 }
   0x3   :  { %22 = vsyncpa [#allocation4], 0 }
   0x4   :  { %23 = vsyncpa [#allocation6], 0 }
   0x5   :  { %24 = vsyncpa [#allocation9], 0 }
   0x6   :  { %25 = vsyncpa [#allocation12], 0 }
   0x7   :  { %26 = vsyncpa [#allocation15], 0  ;;  %s2852_s20 = smov [#allocation5]   ;;  %s2853_s22 = smov [#allocation8]  }
   0x8   :  { %s44_s21 = sshll.u32 %s2852_s20, 4  ;;  %s76_s23 = sshll.u32 %s2853_s22, 4  ;;  %s45_s21 = int_to_ptr.vmem [resolvable:$true] %s44_s21  ;;  %s2947_s23 = int_to_ptr.vmem [resolvable:$true] %s76_s23 }
   0x9   :  { %s2666_s26 = scalar_lea.hbm %s3573_s1, 2048 }
   0xa   :  { %p2667_p0 = scmp.ne.s32.totalorder %s3573_s1, %s2666_s26  ;;  %p2670_p1 = scmp.lt.u32.totalorder %s2666_s26, %s3573_s1 }
   0xc   :  { %p2672_p2 = pnand %p2670_p1, %p2667_p0 }
   0xe   :  { %2675 = shalt.err (!%p2672_p2)
}
   0xf   :  { %s2676_s30 = scalar_lea.vmem %s45_s21, 2048  ;;  %p2681_p4 = scmp.lt.s32.totalorder %s45_s21, %s45_s21 }
  0x10   :  { %p2677_p3 = scmp.ne.s32.totalorder %s45_s21, %s2676_s30  ;;  %p2682_p5 = scmp.lt.s32.totalorder %s2676_s30, %s2676_s30 }
  0x12   :  { %p2683_p6 = por %p2682_p5, %p2681_p4 }
  0x14   :  { %p2684_p7 = pnand %p2683_p6, %p2677_p3 }
  0x16   :  { %2687 = shalt.err (!%p2684_p7)
}
  0x17   :  { %s2854_s16 = smov 128   ;;  %s2855_s17 = smov 8  }
  0x18   :  { %50 = dma.hbm_to_vmem [thread:$0]  %s3573_s1, 2048, %s45_s21, [#allocation6], %s2854_s16, %s2854_s16, %s2855_s17  }
  0x19   :  { %s2688_s24 = scalar_lea.hbm %s3579_s7, 512 }
  0x1a   :  { %p2689_p8 = scmp.ne.s32.totalorder %s3579_s7, %s2688_s24  ;;  %p2692_p9 = scmp.lt.u32.totalorder %s2688_s24, %s3579_s7 }
  0x1c   :  { %p2694_p10 = pnand %p2692_p9, %p2689_p8 }
  0x1e   :  { %2697 = shalt.err (!%p2694_p10)
}
  0x1f   :  { %s2698_s14 = scalar_lea.vmem %s2947_s23, 512  ;;  %p2703_p12 = scmp.lt.s32.totalorder %s2947_s23, %s2947_s23 }
  0x20   :  { %p2699_p11 = scmp.ne.s32.totalorder %s2947_s23, %s2698_s14  ;;  %p2704_p13 = scmp.lt.s32.totalorder %s2698_s14, %s2698_s14 }
  0x22   :  { %p2705_p0 = por %p2704_p13, %p2703_p12 }
  0x24   :  { %p2706_p1 = pnand %p2705_p0, %p2699_p11 }
  0x26   :  { %2709 = shalt.err (!%p2706_p1)
}
  0x27   :  { %82 = dma.hbm_to_vmem [thread:$0]  %s3579_s7, 512, %s2947_s23, [#allocation9], %s2854_s16, %s2854_s16, %s2855_s17  }
  0x28   :  { %s2856_s29 = smov [#allocation11]   ;;  %s2857_s18 = smov [#allocation3]  }
  0x29   :  { %s104_s30 = sshll.u32 %s2856_s29, 4  ;;  %s32_s19 = sshll.u32 %s2857_s18, 4  ;;  %s105_s30 = int_to_ptr.vmem [resolvable:$true] %s104_s30  ;;  %s2984_s19 = int_to_ptr.vmem [resolvable:$true] %s32_s19 }
  0x2a   :  { %s2710_s24 = scalar_lea.hbm %s3583_s11, 1024 }
  0x2b   :  { %p2711_p2 = scmp.ne.s32.totalorder %s3583_s11, %s2710_s24  ;;  %p2714_p3 = scmp.lt.u32.totalorder %s2710_s24, %s3583_s11 }
  0x2d   :  { %p2716_p4 = pnand %p2714_p3, %p2711_p2 }
  0x2f   :  { %2719 = shalt.err (!%p2716_p4)
}
  0x30   :  { %s2720_s7 = scalar_lea.vmem %s105_s30, 1024  ;;  %p2725_p6 = scmp.lt.s32.totalorder %s105_s30, %s105_s30 }
  0x31   :  { %p2721_p5 = scmp.ne.s32.totalorder %s105_s30, %s2720_s7  ;;  %p2726_p7 = scmp.lt.s32.totalorder %s2720_s7, %s2720_s7 }
  0x33   :  { %p2727_p8 = por %p2726_p7, %p2725_p6 }
  0x35   :  { %p2728_p9 = pnand %p2727_p8, %p2721_p5 }
  0x37   :  { %2731 = shalt.err (!%p2728_p9)
}
  0x38   :  { %110 = dma.hbm_to_vmem [thread:$0]  %s3583_s11, 1024, %s105_s30, [#allocation12], %s2854_s16, %s2854_s16, %s2855_s17  }
  0x39   :  { %s2732_s29 = scalar_lea.hbm %s3572_s0, 2048 }
  0x3a   :  { %p2733_p10 = scmp.ne.s32.totalorder %s3572_s0, %s2732_s29  ;;  %p2736_p11 = scmp.lt.u32.totalorder %s2732_s29, %s3572_s0 }
  0x3c   :  { %p2738_p12 = pnand %p2736_p11, %p2733_p10 }
  0x3e   :  { %2741 = shalt.err (!%p2738_p12)
}
  0x3f   :  { %s2742_s25 = scalar_lea.vmem %s2984_s19, 2048  ;;  %p2747_p0 = scmp.lt.s32.totalorder %s2984_s19, %s2984_s19 }
  0x40   :  { %p2743_p13 = scmp.ne.s32.totalorder %s2984_s19, %s2742_s25  ;;  %p2748_p1 = scmp.lt.s32.totalorder %s2742_s25, %s2742_s25 }
  0x42   :  { %p2749_p2 = por %p2748_p1, %p2747_p0 }
  0x44   :  { %p2750_p3 = pnand %p2749_p2, %p2743_p13 }
  0x46   :  { %2753 = shalt.err (!%p2750_p3)
}
  0x47   :  { %38 = dma.hbm_to_vmem [thread:$0]  %s3572_s0, 2048, %s2984_s19, [#allocation4], %s2854_s16, %s2854_s16, %s2855_s17  }
  0x48   :  { %s2858_s26 = smov [#allocation7]   ;;  %s2859_s28 = smov [#allocation10]  }
  0x49   :  { %s58_s27 = sshll.u32 %s2858_s26, 4  ;;  %s90_s7 = sshll.u32 %s2859_s28, 4  ;;  %s59_s27 = int_to_ptr.vmem [resolvable:$true] %s58_s27  ;;  %s3021_s7 = int_to_ptr.vmem [resolvable:$true] %s90_s7 }
  0x4a   :  { %s2754_s1 = scalar_lea.hbm %s3575_s3, 1024 }
  0x4b   :  { %p2755_p4 = scmp.ne.s32.totalorder %s3575_s3, %s2754_s1  ;;  %p2758_p5 = scmp.lt.u32.totalorder %s2754_s1, %s3575_s3 }
  0x4d   :  { %p2760_p6 = pnand %p2758_p5, %p2755_p4 }
  0x4f   :  { %2763 = shalt.err (!%p2760_p6)
}
  0x50   :  { %s2764_s0 = scalar_lea.vmem %s59_s27, 1024  ;;  %p2769_p8 = scmp.lt.s32.totalorder %s59_s27, %s59_s27 }
  0x51   :  { %p2765_p7 = scmp.ne.s32.totalorder %s59_s27, %s2764_s0  ;;  %p2770_p9 = scmp.lt.s32.totalorder %s2764_s0, %s2764_s0 }
  0x53   :  { %p2771_p10 = por %p2770_p9, %p2769_p8 }
  0x55   :  { %p2772_p11 = pnand %p2771_p10, %p2765_p7 }
  0x57   :  { %2775 = shalt.err (!%p2772_p11)
}
  0x58   :  { %64 = dma.hbm_to_vmem [thread:$0]  %s3575_s3, 1024, %s59_s27, [#allocation6], %s2854_s16, %s2854_s16, %s2855_s17  }
  0x59   :  { %s2776_s11 = scalar_lea.hbm %s3581_s9, 512 }
  0x5a   :  { %p2777_p12 = scmp.ne.s32.totalorder %s3581_s9, %s2776_s11  ;;  %p2780_p13 = scmp.lt.u32.totalorder %s2776_s11, %s3581_s9 }
  0x5c   :  { %p2782_p0 = pnand %p2780_p13, %p2777_p12 }
  0x5e   :  { %2785 = shalt.err (!%p2782_p0)
}
  0x5f   :  { %s2786_s14 = scalar_lea.vmem %s3021_s7, 512  ;;  %p2791_p2 = scmp.lt.s32.totalorder %s3021_s7, %s3021_s7 }
  0x60   :  { %p2787_p1 = scmp.ne.s32.totalorder %s3021_s7, %s2786_s14  ;;  %p2792_p3 = scmp.lt.s32.totalorder %s2786_s14, %s2786_s14 }
  0x62   :  { %p2793_p4 = por %p2792_p3, %p2791_p2 }
  0x64   :  { %p2794_p5 = pnand %p2793_p4, %p2787_p1 }
  0x66   :  { %2797 = shalt.err (!%p2794_p5)
}
  0x67   :  { %96 = dma.hbm_to_vmem [thread:$0]  %s3581_s9, 512, %s3021_s7, [#allocation9], %s2854_s16, %s2854_s16, %s2855_s17  }
  0x68   :  { %s2860_s1 = smov [#allocation13]   ;;  %s2861_s29 = smov [#allocation14]  }
  0x69   :  { %s117_s21 = sshll.u32 %s2860_s1, 4  ;;  %s127_s18 = sshll.u32 %s2861_s29, 4  ;;  %s118_s21 = int_to_ptr.vmem [resolvable:$true] %s117_s21  ;;  %s128_s18 = int_to_ptr.vmem [resolvable:$true] %s127_s18 }
  0x6a   :  { %s2798_s19 = scalar_lea.hbm %s3584_s12, 16 }
  0x6b   :  { %p2799_p6 = scmp.ne.s32.totalorder %s3584_s12, %s2798_s19  ;;  %p2802_p7 = scmp.lt.u32.totalorder %s2798_s19, %s3584_s12 }
  0x6d   :  { %p2804_p8 = pnand %p2802_p7, %p2799_p6 }
  0x6f   :  { %2807 = shalt.err (!%p2804_p8)
}
  0x70   :  { %s2808_s9 = scalar_lea.vmem %s118_s21, 16  ;;  %s2812_s16 = scalar_lea.vmem %s118_s21, 32 }
  0x71   :  { %p2809_p9 = scmp.ne.s32.totalorder %s118_s21, %s2808_s9  ;;  %p2813_p10 = scmp.lt.s32.totalorder %s118_s21, %s118_s21 }
  0x72   :  { %p2814_p11 = scmp.lt.s32.totalorder %s2812_s16, %s2808_s9 }
  0x74   :  { %p2815_p12 = por %p2814_p11, %p2813_p10 }
  0x76   :  { %p2816_p13 = pnand %p2815_p12, %p2809_p9 }
  0x78   :  { %2819 = shalt.err (!%p2816_p13)
}
  0x79   :  { %120 = dma.hbm_to_vmem [thread:$0]  %s3584_s12, 16, %s118_s21, [#allocation12]  }
  0x7a   :  { %s2820_s28 = scalar_lea.hbm %s3585_s13, 16 }
  0x7b   :  { %p2821_p0 = scmp.ne.s32.totalorder %s3585_s13, %s2820_s28  ;;  %p2824_p1 = scmp.lt.u32.totalorder %s2820_s28, %s3585_s13 }
  0x7d   :  { %p2826_p2 = pnand %p2824_p1, %p2821_p0 }
  0x7f   :  { %2829 = shalt.err (!%p2826_p2)
}
  0x80   :  { %s2830_s1 = scalar_lea.vmem %s128_s18, 16  ;;  %s2834_s29 = scalar_lea.vmem %s128_s18, 32 }
  0x81   :  { %p2831_p3 = scmp.ne.s32.totalorder %s128_s18, %s2830_s1  ;;  %p2835_p4 = scmp.lt.s32.totalorder %s128_s18, %s128_s18 }
  0x82   :  { %p2836_p5 = scmp.lt.s32.totalorder %s2834_s29, %s2830_s1 }
  0x84   :  { %p2837_p6 = por %p2836_p5, %p2835_p4 }
  0x86   :  { %p2838_p7 = pnand %p2837_p6, %p2831_p3 }
  0x88   :  { %2841 = shalt.err (!%p2838_p7)
}
  0x89   :  { %130 = dma.hbm_to_vmem [thread:$0]  %s3585_s13, 16, %s128_s18, [#allocation15]  }
  0x8a   :  { %2842 = dma.done.wait [#allocation4], 2048  }
  0x8b   :  { %2843 = vsyncadd [#allocation4], 4294965248 }
  0x8c   :  { %2844 = dma.done.wait [#allocation6], 3072  }
  0x8d   :  { %2845 = vsyncadd [#allocation6], 4294964224 }
  0x8e   :  { %2846 = dma.done.wait [#allocation9], 1024  }
  0x8f   :  { %2847 = vsyncadd [#allocation9], 4294966272 }
  0x90   :  { %2848 = dma.done.wait [#allocation12], 1040  }
  0x91   :  { %2849 = vsyncadd [#allocation12], 4294966256 }
  0x92   :  { %2850 = dma.done.wait [#allocation15], 16  }
  0x93   :  { %2851 = vsyncadd [#allocation15], 4294967280  ;;  %v173_v1 = vld [vmem:[#allocation5] sm:$0xff]  ;;  %v174_v2 = vld [vmem:[#allocation5 + $0x8] sm:$0xff]  ;;  %vm372_vm0 = vcmask 523264   ;;  %vm593_vm1 = vcmask 261120  }
  0x94   :  { %v175_v3 = vld [vmem:[#allocation5 + $0x10] sm:$0xff]  ;;  %v2434_v4 = vpack.c.bf16 %v174_v2, %v173_v1  ;;  %v176_v5 = vld [vmem:[#allocation5 + $0x18] sm:$0xff]  ;;  %v177_v7 = vld [vmem:[#allocation5 + $0x20] sm:$0xff]  ;;  %vm1636_vm2 = vcmask 130048   ;;  %vm1884_vm3 = vcmask 269312  }
  0x95   :  { %v2438_v6 = vpack.c.bf16 %v176_v5, %v175_v3  ;;  %v178_v8 = vld [vmem:[#allocation5 + $0x28] sm:$0xff]  ;;  %v157_v10 = vld [vmem:[#allocation3] sm:$0xff]  ;;  %v179_v11 = vld [vmem:[#allocation5 + $0x30] sm:$0xff] }
  0x96   :  { %2435 = vmatprep.subr.bf16.mxu0 %v2434_v4  ;;  %v2442_v9 = vpack.c.bf16 %v178_v8, %v177_v7  ;;  %v180_v12 = vld [vmem:[#allocation5 + $0x38] sm:$0xff]  ;;  %2234 = vmatprep.mubr.f32.mxu0 %v157_v10  ;;  %v181_v14 = vld [vmem:[#allocation5 + $0x40] sm:$0xff]  ;;  %v182_v15 = vld [vmem:[#allocation5 + $0x48] sm:$0xff] }
  0x97   :  { %2437 = vmatpush3.bf16.msra.mxu0 %v2434_v4  ;;  %v2446_v13 = vpack.c.bf16 %v180_v12, %v179_v11  ;;  %v357_v16 = vld [vmem:[#allocation7] sm:$0xff]  ;;  %v358_v17 = vld [vmem:[#allocation7 + $0x8] sm:$0xff]  ;;  %v359_v18 = vld [vmem:[#allocation7 + $0x10] sm:$0xff]  ;;  %v2450_v22 = vpack.c.bf16 %v182_v15, %v181_v14 }
  0x98   :  { %2439 = vmatprep.subr.bf16.mxu0 %v2438_v6  ;;  %v360_v19 = vld [vmem:[#allocation7 + $0x18] sm:$0xff]  ;;  %v2466_v20 = vpack.c.bf16 %v358_v17, %v357_v16  ;;  %v361_v23 = vld [vmem:[#allocation7 + $0x20] sm:$0xff]  ;;  %v362_v24 = vld [vmem:[#allocation7 + $0x28] sm:$0xff] }
  0x99   :  { %v2470_v21 = vpack.c.bf16 %v360_v19, %v359_v18  ;;  %v183_v25 = vld [vmem:[#allocation5 + $0x50] sm:$0xff]  ;;  %v184_v26 = vld [vmem:[#allocation5 + $0x58] sm:$0xff]  ;;  %v2474_v27 = vpack.c.bf16 %v362_v24, %v361_v23  ;;  %v185_v29 = vld [vmem:[#allocation5 + $0x60] sm:$0xff] }
  0x9a   :  { %2467 = vmatprep.subr.bf16.mxu1 %v2466_v20  ;;  %v2454_v28 = vpack.c.bf16 %v184_v26, %v183_v25  ;;  %v186_v30 = vld [vmem:[#allocation5 + $0x68] sm:$0xff]  ;;  %v187_v32 = vld [vmem:[#allocation5 + $0x70] sm:$0xff]  ;;  %v188_v33 = vld [vmem:[#allocation5 + $0x78] sm:$0xff] }
  0x9b   :  { %2441 = vmatpush3.bf16.msra.mxu0 %v2438_v6  ;;  %2469 = vmatpush3.bf16.msra.mxu1 %v2466_v20  ;;  %v2458_v31 = vpack.c.bf16 %v186_v30, %v185_v29  ;;  %v2462_v34 = vpack.c.bf16 %v188_v33, %v187_v32  ;;  %v158_v35 = vld [vmem:[#allocation3 + $0x8] sm:$0xff]  ;;  %v159_v36 = vld [vmem:[#allocation3 + $0x10] sm:$0xff]  ;;  %v160_v37 = vld [vmem:[#allocation3 + $0x18] sm:$0xff] }
  0x9c   :  { %2443 = vmatprep.subr.bf16.mxu0 %v2442_v9  ;;  %2471 = vmatprep.subr.bf16.mxu1 %v2470_v21  ;;  %v161_v38 = vld [vmem:[#allocation3 + $0x20] sm:$0xff]  ;;  %v162_v39 = vld [vmem:[#allocation3 + $0x28] sm:$0xff]  ;;  %v163_v40 = vld [vmem:[#allocation3 + $0x30] sm:$0xff] }
  0x9d   :  { %v164_v41 = vld [vmem:[#allocation3 + $0x38] sm:$0xff]  ;;  %v165_v42 = vld [vmem:[#allocation3 + $0x40] sm:$0xff]  ;;  %v166_v43 = vld [vmem:[#allocation3 + $0x48] sm:$0xff] }
  0x9e   :  { %v167_v44 = vld [vmem:[#allocation3 + $0x50] sm:$0xff]  ;;  %v168_v45 = vld [vmem:[#allocation3 + $0x58] sm:$0xff]  ;;  %v169_v46 = vld [vmem:[#allocation3 + $0x60] sm:$0xff] }
  0x9f   :  { %2445 = vmatpush3.bf16.msra.mxu0 %v2442_v9  ;;  %2473 = vmatpush3.bf16.msra.mxu1 %v2470_v21  ;;  %v170_v47 = vld [vmem:[#allocation3 + $0x68] sm:$0xff]  ;;  %v171_v48 = vld [vmem:[#allocation3 + $0x70] sm:$0xff]  ;;  %v172_v49 = vld [vmem:[#allocation3 + $0x78] sm:$0xff] }
  0xa0   :  { %2447 = vmatprep.subr.bf16.mxu0 %v2446_v13  ;;  %2475 = vmatprep.subr.bf16.mxu1 %v2474_v27  ;;  %v363_v50 = vld [vmem:[#allocation7 + $0x30] sm:$0xff]  ;;  %v364_v51 = vld [vmem:[#allocation7 + $0x38] sm:$0xff]  ;;  %v583_v54 = vld [vmem:[%s3577_s5 + $0x8] sm:$0xff] }
  0xa1   :  { %v2478_v52 = vpack.c.bf16 %v364_v51, %v363_v50  ;;  %v582_v53 = vld [vmem:[%s3577_s5] sm:$0xff]  ;;  %v584_v61 = vld [vmem:[%s3577_s5 + $0x10] sm:$0xff]  ;;  %v585_v62 = vld [vmem:[%s3577_s5 + $0x18] sm:$0xff] }
  0xa2   :  { %v2482_v55 = vpack.c.bf16 %v583_v54, %v582_v53  ;;  %v3091_v56 = vld [vmem:[%s3574_s2] ss:$0 sm:$0xff]  ;;  %v2486_v4 = vpack.c.bf16 %v585_v62, %v584_v61 }
  0xa3   :  { %2449 = vmatpush3.bf16.msra.mxu0 %v2446_v13  ;;  %2477 = vmatpush3.bf16.msra.mxu1 %v2474_v27  ;;  %v1943_v50 = vld [vmem:[%s3576_s4] ss:$0 sm:$0xff]  ;;  %s2862_s4 = smov 32  }
  0xa4   :  { %2451 = vmatprep.subr.bf16.mxu0 %v2450_v22  ;;  %2479 = vmatprep.subr.bf16.mxu1 %v2478_v52 }
  0xa7   :  { %2453 = vmatpush3.bf16.msra.mxu0 %v2450_v22  ;;  %2481 = vmatpush3.bf16.msra.mxu1 %v2478_v52 }
  0xa8   :  { %2455 = vmatprep.subr.bf16.mxu0 %v2454_v28  ;;  %2483 = vmatprep.subr.bf16.mxu1 %v2482_v55 }
  0xab   :  { %2457 = vmatpush3.bf16.msra.mxu0 %v2454_v28 }
  0xac   :  { %2459 = vmatprep.subr.bf16.mxu0 %v2458_v31 }
  0xaf   :  { %2461 = vmatpush3.bf16.msra.mxu0 %v2458_v31 }
  0xb0   :  { %2463 = vmatprep.subr.bf16.mxu0 %v2462_v34 }
  0xb3   :  { %2465 = vmatpush3.bf16.msra.mxu0 %v2462_v34 }
  0xb6   :  { %2235 = vmatmul.mubr.f32.vlgmr.msra.gmra.mrb[0].mxu0 %v158_v35 }
  0xb7   :  { %2237 = vmatprep.mubr.f32.mxu0 %v159_v36 }
  0xba   :  { %2238 = vmatmul.mubr.f32.gmra.mrb[2].mxu0 %v160_v37 }
  0xbb   :  { %2240 = vmatprep.mubr.f32.mxu0 %v161_v38 }
  0xbe   :  { %2241 = vmatmul.mubr.f32.gmra.mrb[4].mxu0 %v162_v39 }
  0xbf   :  { %2243 = vmatprep.mubr.f32.mxu0 %v163_v40 }
  0xc2   :  { %2244 = vmatmul.mubr.f32.gmra.mrb[6].mxu0 %v164_v41 }
  0xc3   :  { %2246 = vmatprep.mubr.f32.mxu0 %v165_v42 }
  0xc6   :  { %2247 = vmatmul.mubr.f32.gmra.mrb[8].mxu0 %v166_v43 }
  0xc7   :  { %2249 = vmatprep.mubr.f32.mxu0 %v167_v44  ;;  %v803_v44 = vld [vmem:[#allocation8] sm:$0xff] }
  0xca   :  { %2250 = vmatmul.mubr.f32.gmra.mrb[10].mxu0 %v168_v45  ;;  %v804_v45 = vld [vmem:[#allocation8 + $0x8] sm:$0xff] }
  0xcb   :  { %2252 = vmatprep.mubr.f32.mxu0 %v169_v46  ;;  %v805_v46 = vld [vmem:[#allocation8 + $0x10] sm:$0xff] }
  0xce   :  { %2253 = vmatmul.mubr.f32.gmra.mrb[12].mxu0 %v170_v47  ;;  %v2490_v47 = vpack.c.bf16 %v804_v45, %v803_v44 }
  0xcf   :  { %2255 = vmatprep.mubr.f32.mxu0 %v171_v48  ;;  %v806_v48 = vld [vmem:[#allocation8 + $0x18] sm:$0xff] }
  0xd0   :  { %2491 = vmatprep.subr.bf16.mxu0 %v2490_v47 }
  0xd1   :  { %2493 = vmatpush3.bf16.msra.mxu0 %v2490_v47 }
  0xd2   :  { %2256 = vmatmul.mubr.f32.gmra.mrb[14].mxu0 %v172_v49  ;;  %v2494_v49 = vpack.c.bf16 %v806_v48, %v805_v46 }
  0xd4   :  { %2495 = vmatprep.subr.bf16.mxu0 %v2494_v49 }
  0xd5   :  { %2497 = vmatpush3.bf16.msra.mxu0 %v2494_v49 }
 0x189   :  { %v2236_v57 = vpop.f32.mrb[0].mxu0 }
 0x18a   :  { %v268_v58 = vadd.f32 %v2236_v57, %v3091_v56  ;;  %v262_v59 = vpop.f32.mrb[1].mxu0 }
 0x18b   :  { %v263_v60 = vadd.f32 %v3091_v56, %v262_v59 }
 0x18c   :  { %v342_v1 = vmax.f32 %v268_v58, 0.0 }
 0x18d   :  { %v341_v63 = vmax.f32 %v263_v60, 0.0  ;;  %v2239_v0 = vpop.f32.mrb[2].mxu0 }
 0x18e   :  { %v278_v2 = vadd.f32 %v2239_v0, %v3091_v56  ;;  %v272_v3 = vpop.f32.mrb[3].mxu0 }
 0x18f   :  { %v273_v5 = vadd.f32 %v3091_v56, %v272_v3  ;;  %2274 = vmatprep.mubr.msk.f32.mxu1 %vm372_vm0, %v341_v63 }
 0x190   :  { %2275 = vmatmul.mubr.msk.f32.vlgmr.msra.gmra.mrb[0].mxu1 %vm372_vm0, %v342_v1  ;;  %v344_v8 = vmax.f32 %v278_v2, 0.0 }
 0x191   :  { %v343_v6 = vmax.f32 %v273_v5, 0.0  ;;  %v2242_v7 = vpop.f32.mrb[4].mxu0  ;;  %2485 = vmatpush3.bf16.msra.mxu1 %v2482_v55 }
 0x192   :  { %v288_v9 = vadd.f32 %v2242_v7, %v3091_v56  ;;  %v282_v10 = vpop.f32.mrb[5].mxu0  ;;  %2487 = vmatprep.subr.bf16.mxu1 %v2486_v4 }
 0x193   :  { %v283_v11 = vadd.f32 %v3091_v56, %v282_v10  ;;  %2277 = vmatprep.mubr.msk.f32.mxu1 %vm372_vm0, %v343_v6 }
 0x194   :  { %2278 = vmatmul.mubr.msk.f32.gmra.mrb[2].mxu1 %vm372_vm0, %v344_v8  ;;  %v346_v14 = vmax.f32 %v288_v9, 0.0 }
 0x195   :  { %v345_v12 = vmax.f32 %v283_v11, 0.0  ;;  %v2245_v13 = vpop.f32.mrb[6].mxu0  ;;  %2489 = vmatpush3.bf16.msra.mxu1 %v2486_v4 }
 0x196   :  { %v298_v15 = vadd.f32 %v2245_v13, %v3091_v56  ;;  %v292_v16 = vpop.f32.mrb[7].mxu0  ;;  %2522 = vmatprep.subr.bf16.mxu1 %v2490_v47 }
 0x197   :  { %v293_v17 = vadd.f32 %v3091_v56, %v292_v16  ;;  %2280 = vmatprep.mubr.msk.f32.mxu1 %vm372_vm0, %v345_v12 }
 0x198   :  { %2281 = vmatmul.mubr.msk.f32.gmra.mrb[4].mxu1 %vm372_vm0, %v346_v14  ;;  %v348_v20 = vmax.f32 %v298_v15, 0.0 }
 0x199   :  { %v347_v18 = vmax.f32 %v293_v17, 0.0  ;;  %v2248_v19 = vpop.f32.mrb[8].mxu0 }
 0x19a   :  { %v308_v21 = vadd.f32 %v2248_v19, %v3091_v56  ;;  %v302_v22 = vpop.f32.mrb[9].mxu0 }
 0x19b   :  { %v303_v23 = vadd.f32 %v3091_v56, %v302_v22  ;;  %2283 = vmatprep.mubr.msk.f32.mxu1 %vm372_vm0, %v347_v18 }
 0x19c   :  { %2284 = vmatmul.mubr.msk.f32.gmra.mrb[6].mxu1 %vm372_vm0, %v348_v20  ;;  %v350_v26 = vmax.f32 %v308_v21, 0.0 }
 0x19d   :  { %v349_v24 = vmax.f32 %v303_v23, 0.0  ;;  %v2251_v25 = vpop.f32.mrb[10].mxu0 }
 0x19e   :  { %v318_v27 = vadd.f32 %v2251_v25, %v3091_v56  ;;  %v312_v28 = vpop.f32.mrb[11].mxu0 }
 0x19f   :  { %v313_v29 = vadd.f32 %v3091_v56, %v312_v28  ;;  %2286 = vmatprep.mubr.msk.f32.mxu1 %vm372_vm0, %v349_v24 }
 0x1a0   :  { %2287 = vmatmul.mubr.msk.f32.gmra.mrb[8].mxu1 %vm372_vm0, %v350_v26  ;;  %v352_v32 = vmax.f32 %v318_v27, 0.0 }
 0x1a1   :  { %v351_v30 = vmax.f32 %v313_v29, 0.0  ;;  %v2254_v31 = vpop.f32.mrb[12].mxu0 }
 0x1a2   :  { %v328_v33 = vadd.f32 %v2254_v31, %v3091_v56  ;;  %v322_v34 = vpop.f32.mrb[13].mxu0 }
 0x1a3   :  { %v323_v35 = vadd.f32 %v3091_v56, %v322_v34  ;;  %2289 = vmatprep.mubr.msk.f32.mxu1 %vm372_vm0, %v351_v30 }
 0x1a4   :  { %2290 = vmatmul.mubr.msk.f32.gmra.mrb[10].mxu1 %vm372_vm0, %v352_v32  ;;  %v354_v38 = vmax.f32 %v328_v33, 0.0 }
 0x1a5   :  { %v353_v36 = vmax.f32 %v323_v35, 0.0  ;;  %v2257_v37 = vpop.f32.mrb[14].mxu0  ;;  %v2044_v35 = vld [vmem:[#allocation14] ss:$0 sm:$0xff] }
 0x1a6   :  { %v338_v39 = vadd.f32 %v2257_v37, %v3091_v56  ;;  %v332_v40 = vpop.f32.mrb[15].mxu0  ;;  %v1024_v37 = vld [vmem:[#allocation10 + $0x8] sm:$0xff]  ;;  %1553 = vrot.lane.b32.xlu0 %v2044_v35, %s2862_s4 }
 0x1a7   :  { %v333_v41 = vadd.f32 %v3091_v56, %v332_v40  ;;  %2292 = vmatprep.mubr.msk.f32.mxu1 %vm372_vm0, %v353_v36  ;;  %v1023_v36 = vld [vmem:[#allocation10] sm:$0xff] }
 0x1a8   :  { %2293 = vmatmul.mubr.msk.f32.gmra.mrb[12].mxu1 %vm372_vm0, %v354_v38  ;;  %v356_v43 = vmax.f32 %v338_v39, 0.0  ;;  %v3151_v38 = vpack.c.bf16 %v1024_v37, %v1023_v36  ;;  %v1960_v39 = vld [vmem:[%s3578_s6] ss:$0 sm:$0xff] }
 0x1a9   :  { %v355_v42 = vmax.f32 %v333_v41, 0.0 }
 0x1ab   :  { %2295 = vmatprep.mubr.msk.f32.mxu1 %vm372_vm0, %v355_v42 }
 0x1ac   :  { %2296 = vmatmul.mubr.msk.f32.gmra.mrb[14].mxu1 %vm372_vm0, %v356_v43 }
 0x263   :  { %v2276_v51 = vpop.f32.mrb[0].mxu1 }
 0x264   :  { %v493_v52 = vadd.f32 %v2276_v51, %v1943_v50  ;;  %v487_v53 = vpop.f32.mrb[1].mxu1 }
 0x265   :  { %v488_v54 = vadd.f32 %v1943_v50, %v487_v53 }
 0x266   :  { %v567_v57 = vmax.f32 %v493_v52, 0.0 }
 0x267   :  { %v566_v55 = vmax.f32 %v488_v54, 0.0  ;;  %v2279_v56 = vpop.f32.mrb[2].mxu1 }
 0x268   :  { %v503_v58 = vadd.f32 %v2279_v56, %v1943_v50  ;;  %v497_v59 = vpop.f32.mrb[3].mxu1 }
 0x269   :  { %v498_v60 = vadd.f32 %v1943_v50, %v497_v59  ;;  %2306 = vmatprep.mubr.msk.f32.mxu1 %vm593_vm1, %v566_v55 }
 0x26a   :  { %2307 = vmatmul.mubr.msk.f32.vlgmr.msra.gmra.mrb[16].mxu1 %vm593_vm1, %v567_v57  ;;  %v569_v63 = vmax.f32 %v503_v58, 0.0 }
 0x26b   :  { %v568_v61 = vmax.f32 %v498_v60, 0.0  ;;  %v2282_v62 = vpop.f32.mrb[4].mxu1  ;;  %2524 = vmatpush3.bf16.msra.mxu1 %v2490_v47 }
 0x26c   :  { %v513_v0 = vadd.f32 %v2282_v62, %v1943_v50  ;;  %v507_v1 = vpop.f32.mrb[5].mxu1  ;;  %2523 = vmatprep.subr.bf16.mxu1 %v2494_v49 }
 0x26d   :  { %v508_v2 = vadd.f32 %v1943_v50, %v507_v1  ;;  %2309 = vmatprep.mubr.msk.f32.mxu1 %vm593_vm1, %v568_v61 }
 0x26e   :  { %2310 = vmatmul.mubr.msk.f32.gmra.mrb[18].mxu1 %vm593_vm1, %v569_v63  ;;  %v571_v5 = vmax.f32 %v513_v0, 0.0 }
 0x26f   :  { %v570_v3 = vmax.f32 %v508_v2, 0.0  ;;  %v2285_v4 = vpop.f32.mrb[6].mxu1  ;;  %2525 = vmatpush3.bf16.msra.mxu1 %v2494_v49 }
 0x270   :  { %v523_v6 = vadd.f32 %v2285_v4, %v1943_v50  ;;  %v517_v7 = vpop.f32.mrb[7].mxu1  ;;  %2499 = vmatprep.subr.bf16.mxu1 %v3151_v38 }
 0x271   :  { %v518_v8 = vadd.f32 %v1943_v50, %v517_v7  ;;  %2312 = vmatprep.mubr.msk.f32.mxu1 %vm593_vm1, %v570_v3 }
 0x272   :  { %2313 = vmatmul.mubr.msk.f32.gmra.mrb[20].mxu1 %vm593_vm1, %v571_v5  ;;  %v573_v11 = vmax.f32 %v523_v6, 0.0 }
 0x273   :  { %v572_v9 = vmax.f32 %v518_v8, 0.0  ;;  %v2288_v10 = vpop.f32.mrb[8].mxu1 }
 0x274   :  { %v533_v12 = vadd.f32 %v2288_v10, %v1943_v50  ;;  %v527_v13 = vpop.f32.mrb[9].mxu1 }
 0x275   :  { %v528_v14 = vadd.f32 %v1943_v50, %v527_v13  ;;  %2315 = vmatprep.mubr.msk.f32.mxu1 %vm593_vm1, %v572_v9 }
 0x276   :  { %2316 = vmatmul.mubr.msk.f32.gmra.mrb[22].mxu1 %vm593_vm1, %v573_v11  ;;  %v575_v17 = vmax.f32 %v533_v12, 0.0 }
 0x277   :  { %v574_v15 = vmax.f32 %v528_v14, 0.0  ;;  %v2291_v16 = vpop.f32.mrb[10].mxu1 }
 0x278   :  { %v543_v18 = vadd.f32 %v2291_v16, %v1943_v50  ;;  %v537_v19 = vpop.f32.mrb[11].mxu1 }
 0x279   :  { %v538_v20 = vadd.f32 %v1943_v50, %v537_v19  ;;  %2318 = vmatprep.mubr.msk.f32.mxu1 %vm593_vm1, %v574_v15 }
 0x27a   :  { %2319 = vmatmul.mubr.msk.f32.gmra.mrb[24].mxu1 %vm593_vm1, %v575_v17  ;;  %v577_v23 = vmax.f32 %v543_v18, 0.0 }
 0x27b   :  { %v576_v21 = vmax.f32 %v538_v20, 0.0  ;;  %v2294_v22 = vpop.f32.mrb[12].mxu1 }
 0x27c   :  { %v553_v24 = vadd.f32 %v2294_v22, %v1943_v50  ;;  %v547_v25 = vpop.f32.mrb[13].mxu1 }
 0x27d   :  { %v548_v26 = vadd.f32 %v1943_v50, %v547_v25  ;;  %2321 = vmatprep.mubr.msk.f32.mxu1 %vm593_vm1, %v576_v21  ;;  %v1026_v25 = vld [vmem:[#allocation10 + $0x18] sm:$0xff] }
 0x27e   :  { %2322 = vmatmul.mubr.msk.f32.gmra.mrb[26].mxu1 %vm593_vm1, %v577_v23  ;;  %v579_v29 = vmax.f32 %v553_v24, 0.0  ;;  %v1025_v24 = vld [vmem:[#allocation10 + $0x10] sm:$0xff] }
 0x27f   :  { %v578_v27 = vmax.f32 %v548_v26, 0.0  ;;  %v2297_v28 = vpop.f32.mrb[14].mxu1  ;;  %v2502_v26 = vpack.c.bf16 %v1026_v25, %v1025_v24 }
 0x280   :  { %v563_v30 = vadd.f32 %v2297_v28, %v1943_v50  ;;  %v557_v31 = vpop.f32.mrb[15].mxu1 }
 0x281   :  { %v558_v32 = vadd.f32 %v1943_v50, %v557_v31  ;;  %2324 = vmatprep.mubr.msk.f32.mxu1 %vm593_vm1, %v578_v27  ;;  %v3257_v27 = vld [vmem:[%s3580_s8] ss:$0 sm:$0xff]  ;;  %s2863_s8 = smov 96  }
 0x282   :  { %2325 = vmatmul.mubr.msk.f32.gmra.mrb[28].mxu1 %vm593_vm1, %v579_v29  ;;  %v581_v34 = vmax.f32 %v563_v30, 0.0 }
 0x283   :  { %v580_v33 = vmax.f32 %v558_v32, 0.0  ;;  %v3261_v32 = vpop.permute.xlu0 %1553 }
 0x285   :  { %2327 = vmatprep.mubr.msk.f32.mxu1 %vm593_vm1, %v580_v33 }
 0x286   :  { %2328 = vmatmul.mubr.msk.f32.gmra.mrb[30].mxu1 %vm593_vm1, %v581_v34 }
 0x33d   :  { %v2308_v40 = vpop.f32.mrb[16].mxu1 }
 0x33e   :  { %v3157_v41 = vadd.f32 %v2308_v40, %v1960_v39  ;;  %v708_v42 = vpop.f32.mrb[17].mxu1 }
 0x33f   :  { %v3159_v43 = vadd.f32 %v1960_v39, %v708_v42 }
 0x340   :  { %v788_v46 = vmax.f32 %v3157_v41, 0.0 }
 0x341   :  { %v787_v44 = vmax.f32 %v3159_v43, 0.0  ;;  %v2311_v45 = vpop.f32.mrb[18].mxu1 }
 0x342   :  { %v3163_v47 = vadd.f32 %v2311_v45, %v1960_v39  ;;  %v718_v48 = vpop.f32.mrb[19].mxu1 }
 0x343   :  { %v3165_v49 = vadd.f32 %v1960_v39, %v718_v48  ;;  %2338 = vmatprep.mubr.msk.f32.mxu0 %vm593_vm1, %v787_v44 }
 0x344   :  { %2339 = vmatmul.mubr.msk.f32.vlgmr.msra.gmra.mrb[16].mxu0 %vm593_vm1, %v788_v46  ;;  %v790_v52 = vmax.f32 %v3163_v47, 0.0 }
 0x345   :  { %v789_v50 = vmax.f32 %v3165_v49, 0.0  ;;  %v2314_v51 = vpop.f32.mrb[20].mxu1 }
 0x346   :  { %v3175_v53 = vadd.f32 %v2314_v51, %v1960_v39  ;;  %v728_v54 = vpop.f32.mrb[21].mxu1 }
 0x347   :  { %v3177_v55 = vadd.f32 %v1960_v39, %v728_v54  ;;  %2341 = vmatprep.mubr.msk.f32.mxu0 %vm593_vm1, %v789_v50 }
 0x348   :  { %2342 = vmatmul.mubr.msk.f32.gmra.mrb[18].mxu0 %vm593_vm1, %v790_v52  ;;  %v792_v58 = vmax.f32 %v3175_v53, 0.0 }
 0x349   :  { %v791_v56 = vmax.f32 %v3177_v55, 0.0  ;;  %v2317_v57 = vpop.f32.mrb[22].mxu1 }
 0x34a   :  { %v3187_v59 = vadd.f32 %v2317_v57, %v1960_v39  ;;  %v738_v60 = vpop.f32.mrb[23].mxu1 }
 0x34b   :  { %v3189_v61 = vadd.f32 %v1960_v39, %v738_v60  ;;  %2344 = vmatprep.mubr.msk.f32.mxu0 %vm593_vm1, %v791_v56 }
 0x34c   :  { %2345 = vmatmul.mubr.msk.f32.gmra.mrb[20].mxu0 %vm593_vm1, %v792_v58  ;;  %v794_v0 = vmax.f32 %v3187_v59, 0.0 }
 0x34d   :  { %v793_v62 = vmax.f32 %v3189_v61, 0.0  ;;  %v2320_v63 = vpop.f32.mrb[24].mxu1 }
 0x34e   :  { %v3199_v1 = vadd.f32 %v2320_v63, %v1960_v39  ;;  %v748_v2 = vpop.f32.mrb[25].mxu1 }
 0x34f   :  { %v3201_v3 = vadd.f32 %v1960_v39, %v748_v2  ;;  %2347 = vmatprep.mubr.msk.f32.mxu0 %vm593_vm1, %v793_v62 }
 0x350   :  { %2348 = vmatmul.mubr.msk.f32.gmra.mrb[22].mxu0 %vm593_vm1, %v794_v0  ;;  %v796_v6 = vmax.f32 %v3199_v1, 0.0 }
 0x351   :  { %v795_v4 = vmax.f32 %v3201_v3, 0.0  ;;  %v2323_v5 = vpop.f32.mrb[26].mxu1 }
 0x352   :  { %v3211_v7 = vadd.f32 %v2323_v5, %v1960_v39  ;;  %v758_v8 = vpop.f32.mrb[27].mxu1 }
 0x353   :  { %v3213_v9 = vadd.f32 %v1960_v39, %v758_v8  ;;  %2350 = vmatprep.mubr.msk.f32.mxu0 %vm593_vm1, %v795_v4 }
 0x354   :  { %2351 = vmatmul.mubr.msk.f32.gmra.mrb[24].mxu0 %vm593_vm1, %v796_v6  ;;  %v798_v12 = vmax.f32 %v3211_v7, 0.0  ;;  %v3478_v7 = vld [vmem:[#allocation13] ss:$0 sm:$0xff] }
 0x355   :  { %v797_v10 = vmax.f32 %v3213_v9, 0.0  ;;  %v2326_v11 = vpop.f32.mrb[28].mxu1 }
 0x356   :  { %v3223_v13 = vadd.f32 %v2326_v11, %v1960_v39  ;;  %v768_v14 = vpop.f32.mrb[29].mxu1 }
 0x357   :  { %v3225_v15 = vadd.f32 %v1960_v39, %v768_v14  ;;  %2353 = vmatprep.mubr.msk.f32.mxu0 %vm593_vm1, %v797_v10 }
 0x358   :  { %2354 = vmatmul.mubr.msk.f32.gmra.mrb[26].mxu0 %vm593_vm1, %v798_v12  ;;  %v800_v18 = vmax.f32 %v3223_v13, 0.0 }
 0x359   :  { %v799_v16 = vmax.f32 %v3225_v15, 0.0  ;;  %v2329_v17 = vpop.f32.mrb[30].mxu1 }
 0x35a   :  { %v3235_v19 = vadd.f32 %v2329_v17, %v1960_v39  ;;  %v778_v20 = vpop.f32.mrb[31].mxu1 }
 0x35b   :  { %v3237_v21 = vadd.f32 %v1960_v39, %v778_v20  ;;  %2356 = vmatprep.mubr.msk.f32.mxu1 %vm593_vm1, %v799_v16 }
 0x35c   :  { %2357 = vmatmul.mubr.msk.f32.vlgmr.msra.gmra.mrb[32].mxu1 %vm593_vm1, %v800_v18  ;;  %v802_v23 = vmax.f32 %v3235_v19, 0.0 }
 0x35d   :  { %v801_v22 = vmax.f32 %v3237_v21, 0.0  ;;  %2501 = vmatpush3.bf16.msra.mxu1 %v3151_v38 }
 0x35e   :  { %2503 = vmatprep.subr.bf16.mxu1 %v2502_v26 }
 0x35f   :  { %2359 = vmatprep.mubr.msk.f32.mxu1 %vm593_vm1, %v801_v22 }
 0x360   :  { %2360 = vmatmul.mubr.msk.f32.gmra.mrb[34].mxu1 %vm593_vm1, %v802_v23 }
 0x361   :  { %2505 = vmatpush3.bf16.msra.mxu1 %v2502_v26 }
 0x417   :  { %v2340_v28 = vpop.f32.mrb[16].mxu0 }
 0x418   :  { %v934_v29 = vadd.f32 %v2340_v28, %v3257_v27  ;;  %v928_v30 = vpop.f32.mrb[17].mxu0 }
 0x419   :  { %v929_v31 = vadd.f32 %v3257_v27, %v928_v30 }
 0x41a   :  { %v1008_v33 = vmax.f32 %v934_v29, 0.0 }
 0x41b   :  { %v1007_v34 = vmax.f32 %v929_v31, 0.0  ;;  %v2343_v35 = vpop.f32.mrb[18].mxu0 }
 0x41c   :  { %v944_v36 = vadd.f32 %v2343_v35, %v3257_v27  ;;  %v938_v37 = vpop.f32.mrb[19].mxu0  ;;  %v1557_v38 = vmul.f32 %v3261_v32, %v1008_v33 }
 0x41d   :  { %v939_v39 = vadd.f32 %v3257_v27, %v938_v37  ;;  %2370 = vmatprep.mubr.msk.f32.mxu1 %vm593_vm1, %v1007_v34  ;;  %v1556_v40 = vmul.f32 %v3261_v32, %v1007_v34 }
 0x41e   :  { %v1010_v42 = vmax.f32 %v944_v36, 0.0  ;;  %1590 = vrot.lane.b32.xlu1 %v1557_v38, %s2863_s8  ;;  %2371 = vmatmul.mubr.msk.f32.vlgmr.msra.gmra.mrb[36].mxu1 %vm593_vm1, %v1008_v33 }
 0x41f   :  { %v1009_v45 = vmax.f32 %v939_v39, 0.0  ;;  %v2346_v48 = vpop.f32.mrb[20].mxu0  ;;  %1588 = vrot.lane.b32.xlu0 %v1556_v40, %s2863_s8 }
 0x420   :  { %v1559_v51 = vmul.f32 %v3261_v32, %v1010_v42  ;;  %v954_v54 = vadd.f32 %v2346_v48, %v3257_v27  ;;  %v948_v57 = vpop.f32.mrb[21].mxu0 }
 0x421   :  { %v1558_v60 = vmul.f32 %v3261_v32, %v1009_v45  ;;  %v949_v63 = vadd.f32 %v3257_v27, %v948_v57  ;;  %2373 = vmatprep.mubr.msk.f32.mxu1 %vm593_vm1, %v1009_v45  ;;  %v1243_v57 = vld [vmem:[#allocation11] sm:$0xff] }
 0x422   :  { %v1012_v2 = vmax.f32 %v954_v54, 0.0  ;;  %2374 = vmatmul.mubr.msk.f32.gmra.mrb[38].mxu1 %vm593_vm1, %v1010_v42 }
 0x423   :  { %v1011_v5 = vmax.f32 %v949_v63, 0.0  ;;  %v2349_v8 = vpop.f32.mrb[22].mxu0  ;;  %1592 = vrot.lane.b32.xlu1 %v1558_v60, %s2863_s8  ;;  %1594 = vrot.lane.b32.xlu0 %v1559_v51, %s2863_s8  ;;  %v1244_v60 = vld [vmem:[#allocation11 + $0x8] sm:$0xff]  ;;  %v1245_v63 = vld [vmem:[#allocation11 + $0x10] sm:$0xff] }
 0x424   :  { %v1561_v11 = vmul.f32 %v3261_v32, %v1012_v2  ;;  %v964_v14 = vadd.f32 %v2349_v8, %v3257_v27  ;;  %v958_v17 = vpop.f32.mrb[23].mxu0 }
 0x425   :  { %v1560_v20 = vmul.f32 %v3261_v32, %v1011_v5  ;;  %v959_v24 = vadd.f32 %v3257_v27, %v958_v17  ;;  %2376 = vmatprep.mubr.msk.f32.mxu1 %vm593_vm1, %v1011_v5 }
 0x426   :  { %v1014_v25 = vmax.f32 %v964_v14, 0.0  ;;  %2377 = vmatmul.mubr.msk.f32.gmra.mrb[40].mxu1 %vm593_vm1, %v1012_v2  ;;  %v1246_v14 = vld [vmem:[#allocation11 + $0x18] sm:$0xff] }
 0x427   :  { %v1013_v26 = vmax.f32 %v959_v24, 0.0  ;;  %v2352_v28 = vpop.f32.mrb[24].mxu0  ;;  %1596 = vrot.lane.b32.xlu1 %v1560_v20, %s2863_s8  ;;  %1598 = vrot.lane.b32.xlu0 %v1561_v11, %s2863_s8  ;;  %v2506_v11 = vpack.c.bf16 %v1244_v60, %v1243_v57  ;;  %v2510_v24 = vpack.c.bf16 %v1246_v14, %v1245_v63 }
 0x428   :  { %v1563_v29 = vmul.f32 %v3261_v32, %v1014_v25  ;;  %v974_v30 = vadd.f32 %v2352_v28, %v3257_v27  ;;  %v968_v31 = vpop.f32.mrb[25].mxu0  ;;  %v1248_v28 = vld [vmem:[#allocation11 + $0x28] sm:$0xff] }
 0x429   :  { %v1562_v33 = vmul.f32 %v3261_v32, %v1013_v26  ;;  %v969_v34 = vadd.f32 %v3257_v27, %v968_v31  ;;  %2379 = vmatprep.mubr.msk.f32.mxu1 %vm593_vm1, %v1013_v26  ;;  %2507 = vmatprep.subr.bf16.mxu0 %v2506_v11  ;;  %v1247_v26 = vld [vmem:[#allocation11 + $0x20] sm:$0xff] }
 0x42a   :  { %v1016_v35 = vmax.f32 %v974_v30, 0.0  ;;  %2380 = vmatmul.mubr.msk.f32.gmra.mrb[42].mxu1 %vm593_vm1, %v1014_v25  ;;  %2509 = vmatpush3.bf16.msra.mxu0 %v2506_v11 }
 0x42b   :  { %v1015_v36 = vmax.f32 %v969_v34, 0.0  ;;  %v2355_v37 = vpop.f32.mrb[26].mxu0  ;;  %1600 = vrot.lane.b32.xlu1 %v1562_v33, %s2863_s8  ;;  %1602 = vrot.lane.b32.xlu0 %v1563_v29, %s2863_s8 }
 0x42c   :  { %v1565_v38 = vmul.f32 %v3261_v32, %v1016_v35  ;;  %v984_v39 = vadd.f32 %v2355_v37, %v3257_v27  ;;  %v978_v40 = vpop.f32.mrb[27].mxu0  ;;  %2511 = vmatprep.subr.bf16.mxu0 %v2510_v24  ;;  %v2514_v37 = vpack.c.bf16 %v1248_v28, %v1247_v26 }
 0x42d   :  { %v1564_v42 = vmul.f32 %v3261_v32, %v1015_v36  ;;  %v979_v45 = vadd.f32 %v3257_v27, %v978_v40  ;;  %2382 = vmatprep.mubr.msk.f32.mxu1 %vm593_vm1, %v1015_v36 }
 0x42e   :  { %v1018_v48 = vmax.f32 %v984_v39, 0.0  ;;  %2383 = vmatmul.mubr.msk.f32.gmra.mrb[44].mxu1 %vm593_vm1, %v1016_v35  ;;  %2513 = vmatpush3.bf16.msra.mxu0 %v2510_v24 }
 0x42f   :  { %v1017_v51 = vmax.f32 %v979_v45, 0.0  ;;  %v2358_v54 = vpop.f32.mrb[32].mxu1  ;;  %1604 = vrot.lane.b32.xlu1 %v1564_v42, %s2863_s8  ;;  %1606 = vrot.lane.b32.xlu0 %v1565_v38, %s2863_s8  ;;  %v1250_v45 = vld [vmem:[#allocation11 + $0x38] sm:$0xff] }
 0x430   :  { %v1567_v2 = vmul.f32 %v3261_v32, %v1018_v48  ;;  %v994_v5 = vadd.f32 %v2358_v54, %v3257_v27  ;;  %v988_v8 = vpop.f32.mrb[33].mxu1  ;;  %2515 = vmatprep.subr.bf16.mxu0 %v2514_v37 }
 0x431   :  { %v1566_v17 = vmul.f32 %v3261_v32, %v1017_v51  ;;  %v989_v20 = vadd.f32 %v3257_v27, %v988_v8  ;;  %2385 = vmatprep.mubr.msk.f32.mxu1 %vm593_vm1, %v1017_v51 }
 0x432   :  { %v1020_v25 = vmax.f32 %v994_v5, 0.0  ;;  %2386 = vmatmul.mubr.msk.f32.gmra.mrb[46].mxu1 %vm593_vm1, %v1018_v48  ;;  %2517 = vmatpush3.bf16.msra.mxu0 %v2514_v37 }
 0x433   :  { %v1019_v29 = vmax.f32 %v989_v20, 0.0  ;;  %v2361_v30 = vpop.f32.mrb[34].mxu1  ;;  %1608 = vrot.lane.b32.xlu1 %v1566_v17, %s2863_s8  ;;  %1610 = vrot.lane.b32.xlu0 %v1567_v2, %s2863_s8 }
 0x434   :  { %v1569_v31 = vmul.f32 %v3261_v32, %v1020_v25  ;;  %v1004_v33 = vadd.f32 %v2361_v30, %v3257_v27  ;;  %v998_v34 = vpop.f32.mrb[35].mxu1 }
 0x435   :  { %v1568_v35 = vmul.f32 %v3261_v32, %v1019_v29  ;;  %v999_v36 = vadd.f32 %v3257_v27, %v998_v34  ;;  %2388 = vmatprep.mubr.msk.f32.mxu1 %vm593_vm1, %v1019_v29  ;;  %v1249_v27 = vld [vmem:[#allocation11 + $0x30] sm:$0xff] }
 0x436   :  { %v1022_v38 = vmax.f32 %v1004_v33, 0.0  ;;  %2389 = vmatmul.mubr.msk.f32.gmra.mrb[48].mxu1 %vm593_vm1, %v1020_v25  ;;  %v2518_v48 = vpack.c.bf16 %v1250_v45, %v1249_v27 }
 0x437   :  { %v1021_v39 = vmax.f32 %v999_v36, 0.0  ;;  %1612 = vrot.lane.b32.xlu1 %v1568_v35, %s2863_s8  ;;  %1614 = vrot.lane.b32.xlu0 %v1569_v31, %s2863_s8 }
 0x438   :  { %v1571_v40 = vmul.f32 %v3261_v32, %v1022_v38  ;;  %2519 = vmatprep.subr.bf16.mxu0 %v2518_v48 }
 0x439   :  { %v1570_v42 = vmul.f32 %v3261_v32, %v1021_v39  ;;  %2391 = vmatprep.mubr.msk.f32.mxu1 %vm593_vm1, %v1021_v39  ;;  %2521 = vmatpush3.bf16.msra.mxu0 %v2518_v48 }
 0x43a   :  { %2392 = vmatmul.mubr.msk.f32.gmra.mrb[50].mxu1 %vm593_vm1, %v1022_v38 }
 0x43b   :  { %1616 = vrot.lane.b32.xlu1 %v1570_v42, %s2863_s8  ;;  %1618 = vrot.lane.b32.xlu0 %v1571_v40, %s2863_s8 }
 0x490   :  { %v1591_v51 = vpop.permute.xlu1 %1590 }
 0x491   :  { %v1589_v54 = vpop.permute.xlu0 %1588  ;;  %v1640_v32 = vsel %vm1636_vm2, %v1591_v51, 0.0  ;;  %v1994_v51 = vld [vmem:[%s3582_s10] ss:$0 sm:$0xff] }
 0x492   :  { %1641 = vadd.xlane.f32.xlu0 %v1640_v32  ;;  %v1637_v57 = vsel %vm1636_vm2, %v1589_v54, 0.0 }
 0x493   :  { %1638 = vadd.xlane.f32.xlu1 %v1637_v57 }
 0x495   :  { %v1593_v60 = vpop.permute.xlu1 %1592  ;;  %v1595_v63 = vpop.permute.xlu0 %1594 }
 0x496   :  { %v1643_v2 = vsel %vm1636_vm2, %v1593_v60, 0.0  ;;  %v1646_v5 = vsel %vm1636_vm2, %v1595_v63, 0.0 }
 0x497   :  { %1644 = vadd.xlane.f32.xlu0 %v1643_v2  ;;  %1647 = vadd.xlane.f32.xlu1 %v1646_v5 }
 0x499   :  { %v1597_v8 = vpop.permute.xlu1 %1596  ;;  %v1599_v11 = vpop.permute.xlu0 %1598 }
 0x49a   :  { %v1649_v14 = vsel %vm1636_vm2, %v1597_v8, 0.0  ;;  %v1652_v17 = vsel %vm1636_vm2, %v1599_v11, 0.0 }
 0x49b   :  { %1650 = vadd.xlane.f32.xlu0 %v1649_v14  ;;  %1653 = vadd.xlane.f32.xlu1 %v1652_v17 }
 0x49d   :  { %v1601_v20 = vpop.permute.xlu1 %1600  ;;  %v1603_v24 = vpop.permute.xlu0 %1602 }
 0x49e   :  { %v1655_v25 = vsel %vm1636_vm2, %v1601_v20, 0.0  ;;  %v1658_v26 = vsel %vm1636_vm2, %v1603_v24, 0.0 }
 0x49f   :  { %1656 = vadd.xlane.f32.xlu0 %v1655_v25  ;;  %1659 = vadd.xlane.f32.xlu1 %v1658_v26 }
 0x4a1   :  { %v1605_v28 = vpop.permute.xlu1 %1604  ;;  %v1607_v29 = vpop.permute.xlu0 %1606 }
 0x4a2   :  { %v1661_v30 = vsel %vm1636_vm2, %v1605_v28, 0.0  ;;  %v1664_v31 = vsel %vm1636_vm2, %v1607_v29, 0.0 }
 0x4a3   :  { %1662 = vadd.xlane.f32.xlu0 %v1661_v30  ;;  %1665 = vadd.xlane.f32.xlu1 %v1664_v31 }
 0x4a5   :  { %v1609_v33 = vpop.permute.xlu1 %1608  ;;  %v1611_v34 = vpop.permute.xlu0 %1610 }
 0x4a6   :  { %v1667_v35 = vsel %vm1636_vm2, %v1609_v33, 0.0  ;;  %v1670_v36 = vsel %vm1636_vm2, %v1611_v34, 0.0 }
 0x4a7   :  { %1668 = vadd.xlane.f32.xlu0 %v1667_v35  ;;  %1671 = vadd.xlane.f32.xlu1 %v1670_v36 }
 0x4a9   :  { %v1613_v37 = vpop.permute.xlu1 %1612  ;;  %v1615_v38 = vpop.permute.xlu0 %1614 }
 0x4aa   :  { %v1673_v39 = vsel %vm1636_vm2, %v1613_v37, 0.0  ;;  %v1676_v40 = vsel %vm1636_vm2, %v1615_v38, 0.0 }
 0x4ab   :  { %1674 = vadd.xlane.f32.xlu0 %v1673_v39  ;;  %1677 = vadd.xlane.f32.xlu1 %v1676_v40 }
 0x4ad   :  { %v1617_v42 = vpop.permute.xlu1 %1616  ;;  %v1619_v27 = vpop.permute.xlu0 %1618 }
 0x4ae   :  { %v1679_v45 = vsel %vm1636_vm2, %v1617_v42, 0.0  ;;  %v1682_v48 = vsel %vm1636_vm2, %v1619_v27, 0.0 }
 0x4af   :  { %1680 = vadd.xlane.f32.xlu0 %v1679_v45  ;;  %1683 = vadd.xlane.f32.xlu1 %v1682_v48 }
 0x4f1   :  { %v2372_v54 = vpop.f32.mrb[36].mxu1 }
 0x4f2   :  { %v1154_v32 = vadd.f32 %v2372_v54, %v1994_v51  ;;  %v1148_v57 = vpop.f32.mrb[37].mxu1 }
 0x4f3   :  { %v1149_v60 = vadd.f32 %v1994_v51, %v1148_v57 }
 0x4f4   :  { %v1228_v5 = vmax.f32 %v1154_v32, 0.0 }
 0x4f5   :  { %v1227_v63 = vmax.f32 %v1149_v60, 0.0  ;;  %v2375_v2 = vpop.f32.mrb[38].mxu1 }
 0x4f6   :  { %v1164_v8 = vadd.f32 %v2375_v2, %v1994_v51  ;;  %v1158_v11 = vpop.f32.mrb[39].mxu1 }
 0x4f7   :  { %v1159_v14 = vadd.f32 %v1994_v51, %v1158_v11  ;;  %2410 = vmatprep.mubr.msk.f32.mxu0 %vm372_vm0, %v1227_v63 }
 0x4f8   :  { %2411 = vmatmul.mubr.msk.f32.vlgmr.msra.gmra.mrb[28].mxu0 %vm372_vm0, %v1228_v5  ;;  %v1230_v24 = vmax.f32 %v1164_v8, 0.0 }
 0x4f9   :  { %v1229_v17 = vmax.f32 %v1159_v14, 0.0  ;;  %v2378_v20 = vpop.f32.mrb[40].mxu1 }
 0x4fa   :  { %v1174_v25 = vadd.f32 %v2378_v20, %v1994_v51  ;;  %v1168_v26 = vpop.f32.mrb[41].mxu1 }
 0x4fb   :  { %v1169_v28 = vadd.f32 %v1994_v51, %v1168_v26  ;;  %2413 = vmatprep.mubr.msk.f32.mxu0 %vm372_vm0, %v1229_v17 }
 0x4fc   :  { %2414 = vmatmul.mubr.msk.f32.gmra.mrb[30].mxu0 %vm372_vm0, %v1230_v24  ;;  %v1232_v31 = vmax.f32 %v1174_v25, 0.0 }
 0x4fd   :  { %v1231_v29 = vmax.f32 %v1169_v28, 0.0  ;;  %v2381_v30 = vpop.f32.mrb[42].mxu1 }
 0x4fe   :  { %v1184_v33 = vadd.f32 %v2381_v30, %v1994_v51  ;;  %v1178_v34 = vpop.f32.mrb[43].mxu1  ;;  %v3360_v30 = vld [vmem:[#allocation2] ss:$0 sm:$0xff] }
 0x4ff   :  { %v1179_v35 = vadd.f32 %v1994_v51, %v1178_v34  ;;  %2416 = vmatprep.mubr.msk.f32.mxu0 %vm372_vm0, %v1231_v29 }
 0x500   :  { %2417 = vmatmul.mubr.msk.f32.gmra.mrb[32].mxu0 %vm372_vm0, %v1232_v31  ;;  %v1234_v38 = vmax.f32 %v1184_v33, 0.0 }
 0x501   :  { %v1233_v36 = vmax.f32 %v1179_v35, 0.0  ;;  %v2384_v37 = vpop.f32.mrb[44].mxu1 }
 0x502   :  { %v1194_v39 = vadd.f32 %v2384_v37, %v1994_v51  ;;  %v1188_v40 = vpop.f32.mrb[45].mxu1 }
 0x503   :  { %v1189_v42 = vadd.f32 %v1994_v51, %v1188_v40  ;;  %2419 = vmatprep.mubr.msk.f32.mxu0 %vm372_vm0, %v1233_v36 }
 0x504   :  { %2420 = vmatmul.mubr.msk.f32.gmra.mrb[34].mxu0 %vm372_vm0, %v1234_v38  ;;  %v1236_v48 = vmax.f32 %v1194_v39, 0.0 }
 0x505   :  { %v1235_v27 = vmax.f32 %v1189_v42, 0.0  ;;  %v2387_v45 = vpop.f32.mrb[46].mxu1 }
 0x506   :  { %v1204_v54 = vadd.f32 %v2387_v45, %v1994_v51  ;;  %v1198_v32 = vpop.f32.mrb[47].mxu1 }
 0x507   :  { %v1199_v57 = vadd.f32 %v1994_v51, %v1198_v32  ;;  %2422 = vmatprep.mubr.msk.f32.mxu0 %vm372_vm0, %v1235_v27 }
 0x508   :  { %2423 = vmatmul.mubr.msk.f32.gmra.mrb[36].mxu0 %vm372_vm0, %v1236_v48  ;;  %v1238_v2 = vmax.f32 %v1204_v54, 0.0 }
 0x509   :  { %v1237_v60 = vmax.f32 %v1199_v57, 0.0  ;;  %v2390_v63 = vpop.f32.mrb[48].mxu1 }
 0x50a   :  { %v1214_v5 = vadd.f32 %v2390_v63, %v1994_v51  ;;  %v1208_v8 = vpop.f32.mrb[49].mxu1 }
 0x50b   :  { %v1209_v11 = vadd.f32 %v1994_v51, %v1208_v8  ;;  %2425 = vmatprep.mubr.msk.f32.mxu0 %vm372_vm0, %v1237_v60 }
 0x50c   :  { %2426 = vmatmul.mubr.msk.f32.gmra.mrb[38].mxu0 %vm372_vm0, %v1238_v2  ;;  %v1240_v20 = vmax.f32 %v1214_v5, 0.0 }
 0x50d   :  { %v1239_v14 = vmax.f32 %v1209_v11, 0.0  ;;  %v2393_v17 = vpop.f32.mrb[50].mxu1 }
 0x50e   :  { %v1224_v24 = vadd.f32 %v2393_v17, %v1994_v51  ;;  %v1218_v25 = vpop.f32.mrb[51].mxu1 }
 0x50f   :  { %v1219_v26 = vadd.f32 %v1994_v51, %v1218_v25  ;;  %2428 = vmatprep.mubr.msk.f32.mxu0 %vm372_vm0, %v1239_v14 }
 0x510   :  { %2429 = vmatmul.mubr.msk.f32.gmra.mrb[40].mxu0 %vm372_vm0, %v1240_v20  ;;  %v1242_v29 = vmax.f32 %v1224_v24, 0.0 }
 0x511   :  { %v1241_v28 = vmax.f32 %v1219_v26, 0.0 }
 0x513   :  { %2431 = vmatprep.mubr.msk.f32.mxu0 %vm372_vm0, %v1241_v28 }
 0x514   :  { %2432 = vmatmul.mubr.msk.f32.gmra.mrb[42].mxu0 %vm372_vm0, %v1242_v29 }
 0x51f   :  { %v1642_v31 = vpop.xlane.xlu0 %1641 }
 0x520   :  { %v1693_v33 = vadd.f32 %v3360_v30, %v1642_v31  ;;  %v1639_v34 = vpop.xlane.xlu1 %1638 }
 0x521   :  { %v1692_v35 = vadd.f32 %v3360_v30, %v1639_v34 }
 0x522   :  { %v2047_v36 = vmul.f32 -1.442695, %v1693_v33 }
 0x523   :  { %v2046_v51 = vmul.f32 -1.442695, %v1692_v35 }
 0x524   :  { %2538 = vpow2.f32 %v2047_v36  ;;  %v1648_v37 = vpop.xlane.xlu1 %1647  ;;  %v1645_v38 = vpop.xlane.xlu0 %1644 }
 0x525   :  { %2540 = vpow2.f32 %v2046_v51  ;;  %v1695_v39 = vadd.f32 %v3360_v30, %v1648_v37  ;;  %v1694_v40 = vadd.f32 %v3360_v30, %v1645_v38 }
 0x527   :  { %v2049_v42 = vmul.f32 -1.442695, %v1695_v39  ;;  %v2048_v27 = vmul.f32 -1.442695, %v1694_v40 }
 0x528   :  { %v1654_v45 = vpop.xlane.xlu1 %1653  ;;  %v1651_v48 = vpop.xlane.xlu0 %1650 }
 0x529   :  { %2542 = vpow2.f32 %v2049_v42  ;;  %v1697_v54 = vadd.f32 %v3360_v30, %v1654_v45  ;;  %v1696_v32 = vadd.f32 %v3360_v30, %v1651_v48 }
 0x52a   :  { %2544 = vpow2.f32 %v2048_v27 }
 0x52b   :  { %v2051_v57 = vmul.f32 -1.442695, %v1697_v54  ;;  %v2050_v60 = vmul.f32 -1.442695, %v1696_v32 }
 0x52c   :  { %v1660_v63 = vpop.xlane.xlu1 %1659  ;;  %v1657_v2 = vpop.xlane.xlu0 %1656 }
 0x52d   :  { %2546 = vpow2.f32 %v2051_v57  ;;  %v1699_v5 = vadd.f32 %v3360_v30, %v1660_v63  ;;  %v1698_v8 = vadd.f32 %v3360_v30, %v1657_v2 }
 0x52e   :  { %v2539_v11 = vpop.eup %2538  ;;  %2548 = vpow2.f32 %v2050_v60 }
 0x52f   :  { %v2541_v14 = vpop.eup %2540  ;;  %v1757_v17 = vadd.f32 1.0, %v2539_v11  ;;  %v2053_v20 = vmul.f32 -1.442695, %v1699_v5  ;;  %v2052_v25 = vmul.f32 -1.442695, %v1698_v8 }
 0x530   :  { %v1756_v24 = vadd.f32 1.0, %v2541_v14  ;;  %v1666_v26 = vpop.xlane.xlu1 %1665  ;;  %v1663_v28 = vpop.xlane.xlu0 %1662 }
 0x531   :  { %2550 = vrcp.f32 %v1757_v17  ;;  %v1701_v29 = vadd.f32 %v3360_v30, %v1666_v26  ;;  %v1700_v31 = vadd.f32 %v3360_v30, %v1663_v28 }
 0x532   :  { %2552 = vrcp.f32 %v1756_v24 }
 0x533   :  { %v2543_v33 = vpop.eup %2542  ;;  %2554 = vpow2.f32 %v2053_v20  ;;  %v2055_v34 = vmul.f32 -1.442695, %v1701_v29  ;;  %v2054_v51 = vmul.f32 -1.442695, %v1700_v31 }
 0x534   :  { %v2545_v35 = vpop.eup %2544  ;;  %v1759_v36 = vadd.f32 1.0, %v2543_v33  ;;  %2556 = vpow2.f32 %v2052_v25  ;;  %v1672_v37 = vpop.xlane.xlu1 %1671 }
 0x535   :  { %v1669_v38 = vpop.xlane.xlu0 %1668  ;;  %v1758_v39 = vadd.f32 1.0, %v2545_v35  ;;  %2558 = vpow2.f32 %v2055_v34  ;;  %v1703_v40 = vadd.f32 %v3360_v30, %v1672_v37 }
 0x536   :  { %v1702_v42 = vadd.f32 %v3360_v30, %v1669_v38  ;;  %2560 = vrcp.f32 %v1759_v36 }
 0x537   :  { %v2547_v27 = vpop.eup %2546  ;;  %2562 = vrcp.f32 %v1758_v39  ;;  %v2057_v45 = vmul.f32 -1.442695, %v1703_v40 }
 0x538   :  { %v2549_v48 = vpop.eup %2548  ;;  %v1761_v54 = vadd.f32 1.0, %v2547_v27  ;;  %2564 = vpow2.f32 %v2054_v51  ;;  %v2056_v32 = vmul.f32 -1.442695, %v1702_v42  ;;  %v1678_v57 = vpop.xlane.xlu1 %1677 }
 0x539   :  { %v1675_v60 = vpop.xlane.xlu0 %1674  ;;  %v1760_v63 = vadd.f32 1.0, %v2549_v48  ;;  %2566 = vpow2.f32 %v2057_v45  ;;  %v1705_v2 = vadd.f32 %v3360_v30, %v1678_v57 }
 0x53a   :  { %v1704_v5 = vadd.f32 %v3360_v30, %v1675_v60  ;;  %2568 = vrcp.f32 %v1761_v54 }
 0x53b   :  { %v2551_v8 = vpop.eup %2550  ;;  %2570 = vrcp.f32 %v1760_v63  ;;  %v2059_v11 = vmul.f32 -1.442695, %v1705_v2 }
 0x53c   :  { %v2058_v14 = vmul.f32 -1.442695, %v1704_v5  ;;  %v2553_v17 = vpop.eup %2552  ;;  %2572 = vpow2.f32 %v2056_v32  ;;  %v1684_v20 = vpop.xlane.xlu1 %1683  ;;  %1822 = vrot.lane.b32.xlu1 %v2551_v8, %s2862_s4 }
 0x53d   :  { %v1681_v24 = vpop.xlane.xlu0 %1680  ;;  %v2555_v25 = vpop.eup %2554  ;;  %2574 = vpow2.f32 %v2059_v11  ;;  %v1707_v26 = vadd.f32 %v3360_v30, %v1684_v20  ;;  %1820 = vrot.lane.b32.xlu0 %v2553_v17, %s2862_s4 }
 0x53e   :  { %v1706_v28 = vadd.f32 %v3360_v30, %v1681_v24  ;;  %v2557_v29 = vpop.eup %2556  ;;  %v1763_v31 = vadd.f32 1.0, %v2555_v25  ;;  %2576 = vpow2.f32 %v2058_v14 }
 0x53f   :  { %v2559_v33 = vpop.eup %2558  ;;  %v1762_v34 = vadd.f32 1.0, %v2557_v29  ;;  %v2061_v35 = vmul.f32 -1.442695, %v1707_v26 }
 0x540   :  { %v2561_v36 = vpop.eup %2560  ;;  %2578 = vrcp.f32 %v1763_v31  ;;  %v1765_v51 = vadd.f32 1.0, %v2559_v33  ;;  %v2060_v37 = vmul.f32 -1.442695, %v1706_v28 }
 0x541   :  { %v2563_v38 = vpop.eup %2562  ;;  %2580 = vrcp.f32 %v1762_v34  ;;  %1826 = vrot.lane.b32.xlu0 %v2561_v36, %s2862_s4 }
 0x542   :  { %v2565_v39 = vpop.eup %2564  ;;  %2582 = vrcp.f32 %v1765_v51  ;;  %1824 = vrot.lane.b32.xlu1 %v2563_v38, %s2862_s4 }
 0x543   :  { %v2567_v30 = vpop.eup %2566  ;;  %v1764_v40 = vadd.f32 1.0, %v2565_v39  ;;  %2584 = vpow2.f32 %v2061_v35 }
 0x544   :  { %v2569_v42 = vpop.eup %2568  ;;  %v1767_v27 = vadd.f32 1.0, %v2567_v30  ;;  %2586 = vpow2.f32 %v2060_v37 }
 0x545   :  { %v2571_v45 = vpop.eup %2570  ;;  %2588 = vrcp.f32 %v1764_v40  ;;  %1830 = vrot.lane.b32.xlu0 %v2569_v42, %s2862_s4 }
 0x546   :  { %v2573_v48 = vpop.eup %2572  ;;  %2590 = vrcp.f32 %v1767_v27  ;;  %1828 = vrot.lane.b32.xlu1 %v2571_v45, %s2862_s4 }
 0x547   :  { %v2575_v54 = vpop.eup %2574  ;;  %v1766_v32 = vadd.f32 1.0, %v2573_v48 }
 0x548   :  { %v2577_v57 = vpop.eup %2576  ;;  %v1769_v60 = vadd.f32 1.0, %v2575_v54 }
 0x549   :  { %2592 = vrcp.f32 %v1766_v32  ;;  %v1768_v63 = vadd.f32 1.0, %v2577_v57 }
 0x54a   :  { %v2579_v2 = vpop.eup %2578  ;;  %2594 = vrcp.f32 %v1769_v60 }
 0x54b   :  { %v2581_v5 = vpop.eup %2580  ;;  %2596 = vrcp.f32 %v1768_v63  ;;  %1834 = vrot.lane.b32.xlu0 %v2579_v2, %s2862_s4 }
 0x54c   :  { %v2583_v8 = vpop.eup %2582  ;;  %1832 = vrot.lane.b32.xlu1 %v2581_v5, %s2862_s4 }
 0x54d   :  { %v2585_v11 = vpop.eup %2584 }
 0x54e   :  { %v2587_v14 = vpop.eup %2586  ;;  %v1771_v17 = vadd.f32 1.0, %v2585_v11 }
 0x54f   :  { %v2589_v20 = vpop.eup %2588  ;;  %v1770_v24 = vadd.f32 1.0, %v2587_v14  ;;  %1838 = vrot.lane.b32.xlu0 %v2583_v8, %s2862_s4 }
 0x550   :  { %v2591_v25 = vpop.eup %2590  ;;  %2598 = vrcp.f32 %v1771_v17  ;;  %1836 = vrot.lane.b32.xlu1 %v2589_v20, %s2862_s4 }
 0x551   :  { %2600 = vrcp.f32 %v1770_v24 }
 0x553   :  { %v2593_v26 = vpop.eup %2592  ;;  %1842 = vrot.lane.b32.xlu0 %v2591_v25, %s2862_s4 }
 0x554   :  { %v2595_v28 = vpop.eup %2594  ;;  %1840 = vrot.lane.b32.xlu1 %v2593_v26, %s2862_s4 }
 0x555   :  { %v2597_v29 = vpop.eup %2596 }
 0x557   :  { %1846 = vrot.lane.b32.xlu0 %v2595_v28, %s2862_s4 }
 0x558   :  { %1844 = vrot.lane.b32.xlu1 %v2597_v29, %s2862_s4 }
 0x55a   :  { %v2599_v31 = vpop.eup %2598 }
 0x55b   :  { %v2601_v33 = vpop.eup %2600  ;;  %1850 = vrot.lane.b32.xlu0 %v2599_v31, %s2862_s4 }
 0x55c   :  { %1848 = vrot.lane.b32.xlu1 %v2601_v33, %s2862_s4 }
 0x5ae   :  { %v1823_v34 = vpop.permute.xlu1 %1822 }
 0x5af   :  { %v1869_v35 = vsel %vm593_vm1, %v788_v46, %v1823_v34  ;;  %v1821_v36 = vpop.permute.xlu0 %1820 }
 0x5b0   :  { %v1886_v51 = vsel %vm1884_vm3, %v1869_v35, 0.0  ;;  %v1868_v37 = vsel %vm593_vm1, %v787_v44, %v1821_v36 }
 0x5b1   :  { %1904 = vst [vmem:[%s3587_s15 + $0x18] sm:$0xff] %v1886_v51  ;;  %v1885_v38 = vsel %vm1884_vm3, %v1868_v37, 0.0 }
 0x5b2   :  { %1902 = vst [vmem:[%s3587_s15 + $0x8] sm:$0xff] %v1885_v38 }
 0x5b3   :  { %v1827_v41 = vpop.permute.xlu0 %1826 }
 0x5b4   :  { %v1825_v39 = vpop.permute.xlu1 %1824  ;;  %v1871_v46 = vsel %vm593_vm1, %v790_v52, %v1827_v41 }
 0x5b5   :  { %v1870_v43 = vsel %vm593_vm1, %v789_v50, %v1825_v39  ;;  %v1888_v44 = vsel %vm1884_vm3, %v1871_v46, 0.0 }
 0x5b6   :  { %v1887_v30 = vsel %vm1884_vm3, %v1870_v43, 0.0  ;;  %1908 = vst [vmem:[%s3587_s15 + $0x38] sm:$0xff] %v1888_v44 }
 0x5b7   :  { %1906 = vst [vmem:[%s3587_s15 + $0x28] sm:$0xff] %v1887_v30  ;;  %v1831_v40 = vpop.permute.xlu0 %1830 }
 0x5b8   :  { %v1829_v47 = vpop.permute.xlu1 %1828  ;;  %v1873_v49 = vsel %vm593_vm1, %v792_v58, %v1831_v40 }
 0x5b9   :  { %v1872_v50 = vsel %vm593_vm1, %v791_v56, %v1829_v47  ;;  %v1890_v52 = vsel %vm1884_vm3, %v1873_v49, 0.0 }
 0x5ba   :  { %v1889_v42 = vsel %vm1884_vm3, %v1872_v50, 0.0  ;;  %1912 = vst [vmem:[%s3587_s15 + $0x58] sm:$0xff] %v1890_v52 }
 0x5bb   :  { %1910 = vst [vmem:[%s3587_s15 + $0x48] sm:$0xff] %v1889_v42 }
 0x5bd   :  { %v1835_v27 = vpop.permute.xlu0 %1834 }
 0x5be   :  { %v1833_v53 = vpop.permute.xlu1 %1832  ;;  %v1875_v55 = vsel %vm593_vm1, %v794_v0, %v1835_v27 }
 0x5bf   :  { %v1874_v56 = vsel %vm593_vm1, %v793_v62, %v1833_v53  ;;  %v1892_v58 = vsel %vm1884_vm3, %v1875_v55, 0.0 }
 0x5c0   :  { %v1891_v45 = vsel %vm1884_vm3, %v1874_v56, 0.0  ;;  %1916 = vst [vmem:[%s3587_s15 + $0x78] sm:$0xff] %v1892_v58 }
 0x5c1   :  { %1914 = vst [vmem:[%s3587_s15 + $0x68] sm:$0xff] %v1891_v45  ;;  %v1839_v48 = vpop.permute.xlu0 %1838 }
 0x5c2   :  { %v1837_v59 = vpop.permute.xlu1 %1836  ;;  %v1877_v61 = vsel %vm593_vm1, %v796_v6, %v1839_v48 }
 0x5c3   :  { %v1876_v62 = vsel %vm593_vm1, %v795_v4, %v1837_v59  ;;  %v1894_v0 = vsel %vm1884_vm3, %v1877_v61, 0.0 }
 0x5c4   :  { %v1893_v54 = vsel %vm1884_vm3, %v1876_v62, 0.0  ;;  %1920 = vst [vmem:[%s3587_s15 + $0x98] sm:$0xff] %v1894_v0 }
 0x5c5   :  { %1918 = vst [vmem:[%s3587_s15 + $0x88] sm:$0xff] %v1893_v54  ;;  %v1843_v32 = vpop.permute.xlu0 %1842 }
 0x5c6   :  { %v1841_v1 = vpop.permute.xlu1 %1840  ;;  %v1879_v3 = vsel %vm593_vm1, %v798_v12, %v1843_v32 }
 0x5c7   :  { %v1878_v4 = vsel %vm593_vm1, %v797_v10, %v1841_v1  ;;  %v1896_v6 = vsel %vm1884_vm3, %v1879_v3, 0.0 }
 0x5c8   :  { %v1895_v57 = vsel %vm1884_vm3, %v1878_v4, 0.0  ;;  %1924 = vst [vmem:[%s3587_s15 + $0xb8] sm:$0xff] %v1896_v6 }
 0x5c9   :  { %1922 = vst [vmem:[%s3587_s15 + $0xa8] sm:$0xff] %v1895_v57  ;;  %v1847_v60 = vpop.permute.xlu0 %1846 }
 0x5ca   :  { %v1845_v12 = vpop.permute.xlu1 %1844  ;;  %v1881_v9 = vsel %vm593_vm1, %v800_v18, %v1847_v60 }
 0x5cb   :  { %v1880_v10 = vsel %vm593_vm1, %v799_v16, %v1845_v12  ;;  %v1898_v63 = vsel %vm1884_vm3, %v1881_v9, 0.0  ;;  %v2412_v2 = vpop.f32.mrb[28].mxu0 }
 0x5cc   :  { %v1897_v5 = vsel %vm1884_vm3, %v1880_v10, 0.0  ;;  %1928 = vst [vmem:[%s3587_s15 + $0xd8] sm:$0xff] %v1898_v63  ;;  %v1378_v8 = vadd.f32 %v2412_v2, %v3478_v7  ;;  %v1372_v11 = vpop.f32.mrb[29].mxu0 }
 0x5cd   :  { %1926 = vst [vmem:[%s3587_s15 + $0xc8] sm:$0xff] %v1897_v5  ;;  %v1851_v13 = vpop.permute.xlu0 %1850  ;;  %v1373_v15 = vadd.f32 %v3478_v7, %v1372_v11 }
 0x5ce   :  { %v1849_v16 = vpop.permute.xlu1 %1848  ;;  %v1883_v18 = vsel %vm593_vm1, %v802_v23, %v1851_v13  ;;  %v2029_v14 = vmul.f32 -1.442695, %v1378_v8 }
 0x5cf   :  { %v1882_v17 = vsel %vm593_vm1, %v801_v22, %v1849_v16  ;;  %v1900_v20 = vsel %vm1884_vm3, %v1883_v18, 0.0  ;;  %v2028_v24 = vmul.f32 -1.442695, %v1373_v15  ;;  %v2415_v25 = vpop.f32.mrb[30].mxu0 }
 0x5d0   :  { %v1899_v26 = vsel %vm1884_vm3, %v1882_v17, 0.0  ;;  %1932 = vst [vmem:[%s3587_s15 + $0xf8] sm:$0xff] %v1900_v20  ;;  %2602 = vpow2.f32 %v2029_v14  ;;  %v1388_v19 = vadd.f32 %v2415_v25, %v3478_v7  ;;  %v1382_v28 = vpop.f32.mrb[31].mxu0 }
 0x5d1   :  { %1930 = vst [vmem:[%s3587_s15 + $0xe8] sm:$0xff] %v1899_v26  ;;  %2604 = vpow2.f32 %v2028_v24  ;;  %v1383_v21 = vadd.f32 %v3478_v7, %v1382_v28 }
 0x5d2   :  { %v2031_v22 = vmul.f32 -1.442695, %v1388_v19 }
 0x5d3   :  { %v2030_v23 = vmul.f32 -1.442695, %v1383_v21  ;;  %v2418_v29 = vpop.f32.mrb[32].mxu0 }
 0x5d4   :  { %2606 = vpow2.f32 %v2031_v22  ;;  %v1398_v31 = vadd.f32 %v2418_v29, %v3478_v7  ;;  %v1392_v33 = vpop.f32.mrb[33].mxu0 }
 0x5d5   :  { %2608 = vpow2.f32 %v2030_v23  ;;  %v1393_v34 = vadd.f32 %v3478_v7, %v1392_v33 }
 0x5d6   :  { %v2033_v35 = vmul.f32 -1.442695, %v1398_v31 }
 0x5d7   :  { %v2032_v36 = vmul.f32 -1.442695, %v1393_v34  ;;  %v2421_v51 = vpop.f32.mrb[34].mxu0 }
 0x5d8   :  { %2610 = vpow2.f32 %v2033_v35  ;;  %v1408_v37 = vadd.f32 %v2421_v51, %v3478_v7  ;;  %v1402_v38 = vpop.f32.mrb[35].mxu0 }
 0x5d9   :  { %2612 = vpow2.f32 %v2032_v36  ;;  %v1403_v41 = vadd.f32 %v3478_v7, %v1402_v38 }
 0x5da   :  { %v2603_v39 = vpop.eup %2602  ;;  %v2035_v46 = vmul.f32 -1.442695, %v1408_v37 }
 0x5db   :  { %v2605_v43 = vpop.eup %2604  ;;  %v1500_v44 = vadd.f32 1.0, %v2603_v39  ;;  %v2034_v30 = vmul.f32 -1.442695, %v1403_v41  ;;  %v2424_v40 = vpop.f32.mrb[36].mxu0 }
 0x5dc   :  { %v1499_v47 = vadd.f32 1.0, %v2605_v43  ;;  %2614 = vpow2.f32 %v2035_v46  ;;  %v1418_v49 = vadd.f32 %v2424_v40, %v3478_v7  ;;  %v1412_v50 = vpop.f32.mrb[37].mxu0 }
 0x5dd   :  { %2616 = vrcp.f32 %v1500_v44  ;;  %v1413_v52 = vadd.f32 %v3478_v7, %v1412_v50 }
 0x5de   :  { %v2607_v42 = vpop.eup %2606  ;;  %2618 = vrcp.f32 %v1499_v47  ;;  %v2037_v27 = vmul.f32 -1.442695, %v1418_v49 }
 0x5df   :  { %v2609_v53 = vpop.eup %2608  ;;  %v1502_v55 = vadd.f32 1.0, %v2607_v42  ;;  %2620 = vpow2.f32 %v2034_v30  ;;  %v2036_v56 = vmul.f32 -1.442695, %v1413_v52  ;;  %v2427_v58 = vpop.f32.mrb[38].mxu0 }
 0x5e0   :  { %v1501_v45 = vadd.f32 1.0, %v2609_v53  ;;  %2622 = vpow2.f32 %v2037_v27  ;;  %v1428_v48 = vadd.f32 %v2427_v58, %v3478_v7  ;;  %v1422_v59 = vpop.f32.mrb[39].mxu0 }
 0x5e1   :  { %2624 = vrcp.f32 %v1502_v55  ;;  %v1423_v61 = vadd.f32 %v3478_v7, %v1422_v59 }
 0x5e2   :  { %v2611_v62 = vpop.eup %2610  ;;  %2626 = vrcp.f32 %v1501_v45  ;;  %v2039_v0 = vmul.f32 -1.442695, %v1428_v48 }
 0x5e3   :  { %v2613_v54 = vpop.eup %2612  ;;  %v1504_v32 = vadd.f32 1.0, %v2611_v62  ;;  %2628 = vpow2.f32 %v2036_v56  ;;  %v2038_v1 = vmul.f32 -1.442695, %v1423_v61  ;;  %v2430_v3 = vpop.f32.mrb[40].mxu0 }
 0x5e4   :  { %v1503_v4 = vadd.f32 1.0, %v2613_v54  ;;  %2630 = vpow2.f32 %v2039_v0  ;;  %v1438_v6 = vadd.f32 %v2430_v3, %v3478_v7  ;;  %v1432_v57 = vpop.f32.mrb[41].mxu0 }
 0x5e5   :  { %2632 = vrcp.f32 %v1504_v32  ;;  %v1433_v60 = vadd.f32 %v3478_v7, %v1432_v57 }
 0x5e6   :  { %v2615_v12 = vpop.eup %2614  ;;  %2634 = vrcp.f32 %v1503_v4  ;;  %v2041_v9 = vmul.f32 -1.442695, %v1438_v6 }
 0x5e7   :  { %v2617_v10 = vpop.eup %2616  ;;  %v1506_v63 = vadd.f32 1.0, %v2615_v12  ;;  %2636 = vpow2.f32 %v2038_v1  ;;  %v2040_v2 = vmul.f32 -1.442695, %v1433_v60  ;;  %v2433_v5 = vpop.f32.mrb[42].mxu0 }
 0x5e8   :  { %v2619_v8 = vpop.eup %2618  ;;  %1903 = vst [vmem:[%s3587_s15 + $0x10] sm:$0xff] %v2617_v10  ;;  %2638 = vpow2.f32 %v2041_v9  ;;  %v1448_v11 = vadd.f32 %v2433_v5, %v3478_v7  ;;  %v1442_v13 = vpop.f32.mrb[43].mxu0 }
 0x5e9   :  { %v2621_v15 = vpop.eup %2620  ;;  %1901 = vst [vmem:[%s3587_s15] sm:$0xff] %v2619_v8  ;;  %2640 = vrcp.f32 %v1506_v63  ;;  %v1443_v16 = vadd.f32 %v3478_v7, %v1442_v13 }
 0x5ea   :  { %v2623_v18 = vpop.eup %2622  ;;  %v1505_v14 = vadd.f32 1.0, %v2621_v15  ;;  %2642 = vpow2.f32 %v2040_v2  ;;  %v2043_v17 = vmul.f32 -1.442695, %v1448_v11 }
 0x5eb   :  { %v2625_v20 = vpop.eup %2624  ;;  %v1508_v24 = vadd.f32 1.0, %v2623_v18  ;;  %v2042_v25 = vmul.f32 -1.442695, %v1443_v16 }
 0x5ec   :  { %v2627_v26 = vpop.eup %2626  ;;  %1907 = vst [vmem:[%s3587_s15 + $0x30] sm:$0xff] %v2625_v20  ;;  %2644 = vrcp.f32 %v1505_v14 }
 0x5ed   :  { %v2629_v19 = vpop.eup %2628  ;;  %1905 = vst [vmem:[%s3587_s15 + $0x20] sm:$0xff] %v2627_v26  ;;  %2646 = vrcp.f32 %v1508_v24 }
 0x5ee   :  { %v2631_v7 = vpop.eup %2630  ;;  %v1507_v28 = vadd.f32 1.0, %v2629_v19  ;;  %2648 = vpow2.f32 %v2043_v17 }
 0x5ef   :  { %v2633_v21 = vpop.eup %2632  ;;  %v1510_v22 = vadd.f32 1.0, %v2631_v7  ;;  %2650 = vpow2.f32 %v2042_v25 }
 0x5f0   :  { %v2635_v23 = vpop.eup %2634  ;;  %1911 = vst [vmem:[%s3587_s15 + $0x50] sm:$0xff] %v2633_v21  ;;  %2652 = vrcp.f32 %v1507_v28 }
 0x5f1   :  { %v2637_v29 = vpop.eup %2636  ;;  %1909 = vst [vmem:[%s3587_s15 + $0x40] sm:$0xff] %v2635_v23  ;;  %2654 = vrcp.f32 %v1510_v22 }
 0x5f2   :  { %v2639_v31 = vpop.eup %2638  ;;  %v1509_v33 = vadd.f32 1.0, %v2637_v29 }
 0x5f3   :  { %v2641_v34 = vpop.eup %2640  ;;  %v1512_v35 = vadd.f32 1.0, %v2639_v31 }
 0x5f4   :  { %v2643_v36 = vpop.eup %2642  ;;  %1915 = vst [vmem:[%s3587_s15 + $0x70] sm:$0xff] %v2641_v34  ;;  %2656 = vrcp.f32 %v1509_v33 }
 0x5f5   :  { %2658 = vrcp.f32 %v1512_v35  ;;  %v1511_v51 = vadd.f32 1.0, %v2643_v36 }
 0x5f6   :  { %v2645_v37 = vpop.eup %2644 }
 0x5f7   :  { %v2647_v38 = vpop.eup %2646  ;;  %1913 = vst [vmem:[%s3587_s15 + $0x60] sm:$0xff] %v2645_v37  ;;  %2660 = vrcp.f32 %v1511_v51 }
 0x5f8   :  { %v2649_v41 = vpop.eup %2648  ;;  %1919 = vst [vmem:[%s3587_s15 + $0x90] sm:$0xff] %v2647_v38 }
 0x5f9   :  { %v2651_v39 = vpop.eup %2650  ;;  %v1514_v46 = vadd.f32 1.0, %v2649_v41 }
 0x5fa   :  { %v2653_v43 = vpop.eup %2652  ;;  %v1513_v44 = vadd.f32 1.0, %v2651_v39 }
 0x5fb   :  { %v2655_v30 = vpop.eup %2654  ;;  %1917 = vst [vmem:[%s3587_s15 + $0x80] sm:$0xff] %v2653_v43  ;;  %2662 = vrcp.f32 %v1514_v46 }
 0x5fc   :  { %1923 = vst [vmem:[%s3587_s15 + $0xb0] sm:$0xff] %v2655_v30  ;;  %2664 = vrcp.f32 %v1513_v44 }
 0x5fe   :  { %v2657_v40 = vpop.eup %2656 }
 0x5ff   :  { %v2659_v47 = vpop.eup %2658  ;;  %1921 = vst [vmem:[%s3587_s15 + $0xa0] sm:$0xff] %v2657_v40 }
 0x600   :  { %1927 = vst [vmem:[%s3587_s15 + $0xd0] sm:$0xff] %v2659_v47 }
 0x601   :  { %v2661_v49 = vpop.eup %2660 }
 0x602   :  { %1925 = vst [vmem:[%s3587_s15 + $0xc0] sm:$0xff] %v2661_v49 }
 0x605   :  { %v2663_v50 = vpop.eup %2662 }
 0x606   :  { %v2665_v52 = vpop.eup %2664  ;;  %1931 = vst [vmem:[%s3587_s15 + $0xf0] sm:$0xff] %v2663_v50 }
 0x607   :  { %1929 = vst [vmem:[%s3587_s15 + $0xe0] sm:$0xff] %v2665_v52 }
 0x608   :  { %1937 = vsyncpa [#allocation4], 1 }
 0x609   :  { %1938 = vsyncpa [#allocation6], 1 }
 0x60a   :  { %1939 = vsyncpa [#allocation9], 1 }
 0x60b   :  { %1940 = vsyncpa [#allocation12], 1 }
 0x60c   :  { %1941 = vsyncpa [#allocation15], 1 }

</bundles_post_ra>
